<compile_context>
chip_gen: v7x
topology: tpu7x:2x2x1
jax: 0.10.0
libtpu: 0.0.40
codegen_flags: <defaults>
</compile_context>

<pallas_src>
import jax
import jax.numpy as jnp
from jax.experimental import pallas as pl
from jax.experimental.pallas import tpu as pltpu

# ----------------------------- model sizes ---------------------------------
N_LAYER = 2
N_EMBED = 128          # E
N_HIDDEN = 512         # H = 4*E (ffn hidden)
VOCAB = 256            # V
LN_EPS = 1e-5


# ------------------------------- kernel ------------------------------------
def _layer_norm(v, w, b):
    mu = jnp.mean(v, axis=-1, keepdims=True)
    var = jnp.mean(jnp.square(v - mu), axis=-1, keepdims=True)
    return (v - mu) * jax.lax.rsqrt(var + LN_EPS) * w + b


def rwkv_kernel(
    # ---- inputs (all resident in VMEM, single program) ----
    x_emb_ref,      # (1, E)        f32  embedding row of `token`
    gvec_ref,       # (4, E)        f32  [ln0_w, ln0_b, lnout_w, lnout_b]
    lvec_ref,       # (L, 11, E)    f32  packed per-layer vectors
    state_in_ref,   # (L, 5, E)     f32
    att_rkv_ref,    # (L, E, 3E)    bf16 [Wr^T | Wk^T | Wv^T]
    att_oT_ref,     # (L, E, E)     bf16
    ffn_rk_ref,     # (L, E, E+H)   bf16 [Wr^T | Wk^T]
    ffn_vT_ref,     # (L, H, E)     bf16
    headT_ref,      # (E, V)        bf16
    # ---- outputs ----
    logits_ref,     # (1, V)        f32
    state_out_ref,  # (L, 5, E)     f32
):
    E, H = N_EMBED, N_HIDDEN
    bf16 = jnp.bfloat16

    # layer_norm0 on the embedding row
    x = _layer_norm(x_emb_ref[...], gvec_ref[0:1, :], gvec_ref[1:2, :])

    for i in range(N_LAYER):            # static unroll; all weights already in VMEM
        st = state_in_ref[i]            # (5, E)
        s0, s1 = st[0:1], st[1:2]
        aa, bb, pp = st[2:3], st[3:4], st[4:5]

        lv = lvec_ref[i]                # (11, E) -- one load per layer
        ln1_w, ln1_b = lv[0:1], lv[1:2]
        ln2_w, ln2_b = lv[2:3], lv[3:4]
        tmk, tmv, tmr = lv[4:5], lv[5:6], lv[6:7]
        tf, td = lv[7:8], lv[8:9]
        ftmk, ftmr = lv[9:10], lv[10:11]

        # ---------------- attention / time mixing ----------------
        xa = _layer_norm(x, ln1_w, ln1_b)
        d = xa - s1
        xr = s1 + tmr * d
        xk = s1 + tmk * d
        xv = s1 + tmv * d
        new_s1 = xa

        # single fused MXU pass: [xr; xk; xv] @ [Wr^T | Wk^T | Wv^T] -> (3, 3E)
        xmix = jnp.concatenate([xr, xk, xv], axis=0).astype(bf16)       # (3, E)
        y = jnp.dot(xmix, att_rkv_ref[i], preferred_element_type=jnp.float32)
        r = jax.nn.sigmoid(y[0:1, 0:E])
        k = y[1:2, E:2 * E]
        v = y[2:3, 2 * E:3 * E]

        ww = tf + k
        qq = jnp.maximum(pp, ww)
        e1 = jnp.exp(pp - qq)
        e2 = jnp.exp(ww - qq)
        wkv = (e1 * aa + e2 * v) / (e1 * bb + e2)      # exact divide (EUP), keep f32

        ww2 = pp + td
        qq2 = jnp.maximum(ww2, k)
        e1b = jnp.exp(ww2 - qq2)
        e2b = jnp.exp(k - qq2)
        new_aa = e1b * aa + e2b * v
        new_bb = e1b * bb + e2b
        new_pp = qq2

        x = x + jnp.dot((r * wkv).astype(bf16), att_oT_ref[i],
                        preferred_element_type=jnp.float32)

        # ---------------- ffn / channel mixing ----------------
        xc = _layer_norm(x, ln2_w, ln2_b)
        d2 = xc - s0
        xr2 = s0 + ftmr * d2
        xk2 = s0 + ftmk * d2
        new_s0 = xc

        # single fused MXU pass: [xr2; xk2] @ [Wr^T | Wk^T] -> (2, E+H)
        xmix2 = jnp.concatenate([xr2, xk2], axis=0).astype(bf16)        # (2, E)
        y2 = jnp.dot(xmix2, ffn_rk_ref[i], preferred_element_type=jnp.float32)
        r2 = jax.nn.sigmoid(y2[0:1, 0:E])
        kk = jnp.square(jnp.maximum(y2[1:2, E:E + H], 0.0))             # (1, H)
        x = x + r2 * jnp.dot(kk.astype(bf16), ffn_vT_ref[i],
                             preferred_element_type=jnp.float32)

        # one (5, E) store instead of five masked partial stores
        state_out_ref[i] = jnp.concatenate(
            [new_s0, new_s1, new_aa, new_bb, new_pp], axis=0)

    # ln_out + head projection (V = 256, lane-dense output)
    xo = _layer_norm(x, gvec_ref[2:3, :], gvec_ref[3:4, :])
    logits_ref[...] = jnp.dot(xo.astype(bf16), headT_ref[...],
                              preferred_element_type=jnp.float32)


# ------------------------------ wrapper -------------------------------------
def pack_params(params):
    """One-time repacking of PyTorch-layout weights (done outside the decode loop)."""
    tT = lambda a: jnp.transpose(a, (0, 2, 1))   # (L, out, in) -> (L, in, out)
    bf = lambda a: a.astype(jnp.bfloat16)
    return {
        "emb": params["emb"],
        "gvec": jnp.stack([params["ln0_w"], params["ln0_b"],
                           params["lnout_w"], params["lnout_b"]], axis=0),
        "lvec": jnp.stack([params["ln1_w"], params["ln1_b"],
                           params["ln2_w"], params["ln2_b"],
                           params["att_tmk"], params["att_tmv"], params["att_tmr"],
                           params["att_tf"], params["att_td"],
                           params["ffn_tmk"], params["ffn_tmr"]], axis=1),
        "att_rkv": bf(jnp.concatenate([tT(params["att_r"]), tT(params["att_k"]),
                                       tT(params["att_v"])], axis=-1)),     # (L, E, 3E)
        "att_oT": bf(tT(params["att_o"])),                                   # (L, E, E)
        "ffn_rk": bf(jnp.concatenate([tT(params["ffn_r"]),
                                      tT(params["ffn_k"])], axis=-1)),       # (L, E, E+H)
        "ffn_vT": bf(tT(params["ffn_v"])),                                   # (L, H, E)
        "headT": bf(params["head"].T),                                       # (E, V)
    }


@jax.jit
def rwkv_forward_pallas(packed, token, state):
    L, E, V = N_LAYER, N_EMBED, VOCAB
    x_emb = packed["emb"][token][None, :]                                    # (1, E)

    vspec = pl.BlockSpec(memory_space=pltpu.MemorySpace.VMEM)
    logits, new_state = pl.pallas_call(
        rwkv_kernel,
        out_shape=(
            jax.ShapeDtypeStruct((1, V), jnp.float32),
            jax.ShapeDtypeStruct((L, 5, E), jnp.float32),
        ),
        in_specs=[vspec] * 9,
        out_specs=(vspec, vspec),
    )(
        x_emb, packed["gvec"], packed["lvec"], state,
        packed["att_rkv"], packed["att_oT"],
        packed["ffn_rk"], packed["ffn_vT"], packed["headT"],
    )
    return logits[0], new_state


# --------------------------- pure-JAX reference ------------------------------
def rwkv_forward_ref(params, token, state):
    def ln(v, w, b):
        mu = jnp.mean(v)
        var = jnp.mean((v - mu) ** 2)
        return (v - mu) / jnp.sqrt(var + LN_EPS) * w + b

    x = params["emb"][token]
    x = ln(x, params["ln0_w"], params["ln0_b"])
    new_state = []
    for i in range(N_LAYER):
        s0, s1, aa, bb, pp = (state[i, j] for j in range(5))
        # attention / time mixing
        xa = ln(x, params["ln1_w"][i], params["ln1_b"][i])
        tmk, tmv, tmr = params["att_tmk"][i], params["att_tmv"][i], params["att_tmr"][i]
        xk = xa * tmk + s1 * (1 - tmk)
        xv = xa * tmv + s1 * (1 - tmv)
        xr = xa * tmr + s1 * (1 - tmr)
        s1n = xa
        r = jax.nn.sigmoid(params["att_r"][i] @ xr)
        k = params["att_k"][i] @ xk
        v = params["att_v"][i] @ xv
        ww = params["att_tf"][i] + k
        qq = jnp.maximum(pp, ww)
        e1, e2 = jnp.exp(pp - qq), jnp.exp(ww - qq)
        wkv = (e1 * aa + e2 * v) / (e1 * bb + e2)
        ww = pp + params["att_td"][i]
        qq = jnp.maximum(ww, k)
        e1, e2 = jnp.exp(ww - qq), jnp.exp(k - qq)
        aan, bbn, ppn = e1 * aa + e2 * v, e1 * bb + e2, qq
        x = x + params["att_o"][i] @ (r * wkv)
        # ffn / channel mixing
        xc = ln(x, params["ln2_w"][i], params["ln2_b"][i])
        ftmk, ftmr = params["ffn_tmk"][i], params["ffn_tmr"][i]
        xk = xc * ftmk + s0 * (1 - ftmk)
        xr = xc * ftmr + s0 * (1 - ftmr)
        s0n = xc
        r2 = jax.nn.sigmoid(params["ffn_r"][i] @ xr)
        kk = jnp.square(jnp.maximum(params["ffn_k"][i] @ xk, 0.0))
        x = x + r2 * (params["ffn_v"][i] @ kk)
        new_state.append(jnp.stack([s0n, s1n, aan, bbn, ppn]))
    x = ln(x, params["lnout_w"], params["lnout_b"])
    logits = params["head"] @ x
    return logits, jnp.stack(new_state)


# ----------------------------- param init ------------------------------------
def init_params(key):
    L, E, H, V = N_LAYER, N_EMBED, N_HIDDEN, VOCAB
    keys = iter(jax.random.split(key, 64))
    nrm = lambda s, sc: jax.random.normal(next(keys), s, jnp.float32) * sc
    uni = lambda s: jax.random.uniform(next(keys), s, jnp.float32, 0.1, 0.9)
    return {
        "emb": nrm((V, E), 0.1),
        "ln0_w": 1.0 + nrm((E,), 0.05), "ln0_b": nrm((E,), 0.05),
        "ln1_w": 1.0 + nrm((L, E), 0.05), "ln1_b": nrm((L, E), 0.05),
        "ln2_w": 1.0 + nrm((L, E), 0.05), "ln2_b": nrm((L, E), 0.05),
        "att_tmk": uni((L, E)), "att_tmv": uni((L, E)), "att_tmr": uni((L, E)),
        "att_tf": nrm((L, E), 0.1),
        "att_td": -jnp.exp(nrm((L, E), 0.5)),          # time_decay is -exp(w)
        "att_r": nrm((L, E, E), E ** -0.5),
        "att_k": nrm((L, E, E), E ** -0.5),
        "att_v": nrm((L, E, E), E ** -0.5),
        "att_o": nrm((L, E, E), E ** -0.5),
        "ffn_tmk": uni((L, E)), "ffn_tmr": uni((L, E)),
        "ffn_r": nrm((L, E, E), E ** -0.5),
        "ffn_k": nrm((L, H, E), E ** -0.5),            # PyTorch (out, in) layout
        "ffn_v": nrm((L, E, H), H ** -0.5),
        "lnout_w": 1.0 + nrm((E,), 0.05), "lnout_b": nrm((E,), 0.05),
        "head": nrm((V, E), E ** -0.5),
    }


# --------------------------------- main --------------------------------------
if __name__ == "__main__":
    params = init_params(jax.random.PRNGKey(0))
    packed = pack_params(params)
    token = 7
    # state == None path of the PyTorch module: zeros with pp channel at -1e30
    state0 = jnp.zeros((N_LAYER, 5, N_EMBED), jnp.float32).at[:, 4, :].set(-1e30)

    logits, new_state = rwkv_forward_pallas(packed, token, state0)
    logits = jax.block_until_ready(logits)
    new_state = jax.block_until_ready(new_state)

    ref_logits, ref_state = rwkv_forward_ref(params, token, state0)
    assert logits.shape == (VOCAB,) and new_state.shape == (N_LAYER, 5, N_EMBED)
    # bf16 weight streaming: allow a slightly looser tolerance than pure f32.
    assert jnp.allclose(logits, ref_logits, rtol=5e-2, atol=5e-2), (
        float(jnp.max(jnp.abs(logits - ref_logits))))
    assert jnp.allclose(new_state, ref_state, rtol=5e-2, atol=5e-2), (
        float(jnp.max(jnp.abs(new_state - ref_state))))

    print("KERNEL_OK")
</pallas_src>

<mosaic_0001>
module attributes {stable_mosaic.version = 11 : i64} {
  func.func @rwkv_kernel(%arg0: memref<1x128xf32, #tpu.memory_space<vmem>>, %arg1: memref<4x128xf32, #tpu.memory_space<vmem>>, %arg2: memref<2x11x128xf32, #tpu.memory_space<vmem>>, %arg3: memref<2x5x128xf32, #tpu.memory_space<vmem>>, %arg4: memref<2x128x384xbf16, #tpu.memory_space<vmem>>, %arg5: memref<2x128x128xbf16, #tpu.memory_space<vmem>>, %arg6: memref<2x128x640xbf16, #tpu.memory_space<vmem>>, %arg7: memref<2x512x128xbf16, #tpu.memory_space<vmem>>, %arg8: memref<128x256xbf16, #tpu.memory_space<vmem>>, %arg9: memref<1x256xf32, #tpu.memory_space<vmem>>, %arg10: memref<2x5x128xf32, #tpu.memory_space<vmem>>) attributes {dimension_semantics = [], scalar_prefetch = 0 : i64, scratch_operands = 0 : i64, tpu.core_type = #tpu.core_type<tc>} {
    %c0 = arith.constant 0 : index
    %c0_0 = arith.constant 0 : index
    %0 = vector.load %arg0[%c0, %c0_0] : memref<1x128xf32, #tpu.memory_space<vmem>>, vector<1x128xf32>
    %c0_1 = arith.constant 0 : index
    %c0_2 = arith.constant 0 : index
    %1 = vector.load %arg1[%c0_1, %c0_2] : memref<4x128xf32, #tpu.memory_space<vmem>>, vector<1x128xf32>
    %c1 = arith.constant 1 : index
    %c0_3 = arith.constant 0 : index
    %2 = vector.load %arg1[%c1, %c0_3] : memref<4x128xf32, #tpu.memory_space<vmem>>, vector<1x128xf32>
    %cst = arith.constant dense<0.000000e+00> : vector<1xf32>
    %3 = vector.multi_reduction <add>, %0, %cst [1] : vector<1x128xf32> to vector<1xf32>
    %4 = vector.shape_cast %3 : vector<1xf32> to vector<1x1xf32>
    %cst_4 = arith.constant 1.280000e+02 : f32
    %5 = vector.broadcast %cst_4 : f32 to vector<1x1xf32>
    %6 = arith.divf %4, %5 : vector<1x1xf32>
    %7 = vector.broadcast %6 : vector<1x1xf32> to vector<1x128xf32>
    %8 = arith.subf %0, %7 : vector<1x128xf32>
    %9 = arith.mulf %8, %8 : vector<1x128xf32>
    %cst_5 = arith.constant dense<0.000000e+00> : vector<1xf32>
    %10 = vector.multi_reduction <add>, %9, %cst_5 [1] : vector<1x128xf32> to vector<1xf32>
    %11 = vector.shape_cast %10 : vector<1xf32> to vector<1x1xf32>
    %cst_6 = arith.constant 1.280000e+02 : f32
    %12 = vector.broadcast %cst_6 : f32 to vector<1x1xf32>
    %13 = arith.divf %11, %12 : vector<1x1xf32>
    %14 = vector.broadcast %6 : vector<1x1xf32> to vector<1x128xf32>
    %15 = arith.subf %0, %14 : vector<1x128xf32>
    %cst_7 = arith.constant 9.99999974E-6 : f32
    %16 = vector.broadcast %cst_7 : f32 to vector<1x1xf32>
    %17 = arith.addf %13, %16 : vector<1x1xf32>
    %18 = math.rsqrt %17 : vector<1x1xf32>
    %19 = vector.broadcast %18 : vector<1x1xf32> to vector<1x128xf32>
    %20 = arith.mulf %15, %19 : vector<1x128xf32>
    %21 = arith.mulf %20, %1 : vector<1x128xf32>
    %22 = arith.addf %21, %2 : vector<1x128xf32>
    %c0_8 = arith.constant 0 : index
    %c0_9 = arith.constant 0 : index
    %c0_10 = arith.constant 0 : index
    %23 = vector.load %arg3[%c0_8, %c0_9, %c0_10] : memref<2x5x128xf32, #tpu.memory_space<vmem>>, vector<1x5x128xf32>
    %24 = vector.shape_cast %23 : vector<1x5x128xf32> to vector<5x128xf32>
    %25 = vector.extract_strided_slice %24 {offsets = [0, 0], sizes = [1, 128], strides = [1, 1]} : vector<5x128xf32> to vector<1x128xf32>
    %26 = vector.extract_strided_slice %24 {offsets = [1, 0], sizes = [1, 128], strides = [1, 1]} : vector<5x128xf32> to vector<1x128xf32>
    %27 = vector.extract_strided_slice %24 {offsets = [2, 0], sizes = [1, 128], strides = [1, 1]} : vector<5x128xf32> to vector<1x128xf32>
    %28 = vector.extract_strided_slice %24 {offsets = [3, 0], sizes = [1, 128], strides = [1, 1]} : vector<5x128xf32> to vector<1x128xf32>
    %29 = vector.extract_strided_slice %24 {offsets = [4, 0], sizes = [1, 128], strides = [1, 1]} : vector<5x128xf32> to vector<1x128xf32>
    %c0_11 = arith.constant 0 : index
    %c0_12 = arith.constant 0 : index
    %c0_13 = arith.constant 0 : index
    %30 = vector.load %arg2[%c0_11, %c0_12, %c0_13] : memref<2x11x128xf32, #tpu.memory_space<vmem>>, vector<1x11x128xf32>
    %31 = vector.shape_cast %30 : vector<1x11x128xf32> to vector<11x128xf32>
    %32 = vector.extract_strided_slice %31 {offsets = [0, 0], sizes = [1, 128], strides = [1, 1]} : vector<11x128xf32> to vector<1x128xf32>
    %33 = vector.extract_strided_slice %31 {offsets = [1, 0], sizes = [1, 128], strides = [1, 1]} : vector<11x128xf32> to vector<1x128xf32>
    %34 = vector.extract_strided_slice %31 {offsets = [2, 0], sizes = [1, 128], strides = [1, 1]} : vector<11x128xf32> to vector<1x128xf32>
    %35 = vector.extract_strided_slice %31 {offsets = [3, 0], sizes = [1, 128], strides = [1, 1]} : vector<11x128xf32> to vector<1x128xf32>
    %36 = vector.extract_strided_slice %31 {offsets = [4, 0], sizes = [1, 128], strides = [1, 1]} : vector<11x128xf32> to vector<1x128xf32>
    %37 = vector.extract_strided_slice %31 {offsets = [5, 0], sizes = [1, 128], strides = [1, 1]} : vector<11x128xf32> to vector<1x128xf32>
    %38 = vector.extract_strided_slice %31 {offsets = [6, 0], sizes = [1, 128], strides = [1, 1]} : vector<11x128xf32> to vector<1x128xf32>
    %39 = vector.extract_strided_slice %31 {offsets = [7, 0], sizes = [1, 128], strides = [1, 1]} : vector<11x128xf32> to vector<1x128xf32>
    %40 = vector.extract_strided_slice %31 {offsets = [8, 0], sizes = [1, 128], strides = [1, 1]} : vector<11x128xf32> to vector<1x128xf32>
    %41 = vector.extract_strided_slice %31 {offsets = [9, 0], sizes = [1, 128], strides = [1, 1]} : vector<11x128xf32> to vector<1x128xf32>
    %42 = vector.extract_strided_slice %31 {offsets = [10, 0], sizes = [1, 128], strides = [1, 1]} : vector<11x128xf32> to vector<1x128xf32>
    %cst_14 = arith.constant dense<0.000000e+00> : vector<1xf32>
    %43 = vector.multi_reduction <add>, %22, %cst_14 [1] : vector<1x128xf32> to vector<1xf32>
    %44 = vector.shape_cast %43 : vector<1xf32> to vector<1x1xf32>
    %cst_15 = arith.constant 1.280000e+02 : f32
    %45 = vector.broadcast %cst_15 : f32 to vector<1x1xf32>
    %46 = arith.divf %44, %45 : vector<1x1xf32>
    %47 = vector.broadcast %46 : vector<1x1xf32> to vector<1x128xf32>
    %48 = arith.subf %22, %47 : vector<1x128xf32>
    %49 = arith.mulf %48, %48 : vector<1x128xf32>
    %cst_16 = arith.constant dense<0.000000e+00> : vector<1xf32>
    %50 = vector.multi_reduction <add>, %49, %cst_16 [1] : vector<1x128xf32> to vector<1xf32>
    %51 = vector.shape_cast %50 : vector<1xf32> to vector<1x1xf32>
    %cst_17 = arith.constant 1.280000e+02 : f32
    %52 = vector.broadcast %cst_17 : f32 to vector<1x1xf32>
    %53 = arith.divf %51, %52 : vector<1x1xf32>
    %54 = vector.broadcast %46 : vector<1x1xf32> to vector<1x128xf32>
    %55 = arith.subf %22, %54 : vector<1x128xf32>
    %cst_18 = arith.constant 9.99999974E-6 : f32
    %56 = vector.broadcast %cst_18 : f32 to vector<1x1xf32>
    %57 = arith.addf %53, %56 : vector<1x1xf32>
    %58 = math.rsqrt %57 : vector<1x1xf32>
    %59 = vector.broadcast %58 : vector<1x1xf32> to vector<1x128xf32>
    %60 = arith.mulf %55, %59 : vector<1x128xf32>
    %61 = arith.mulf %60, %32 : vector<1x128xf32>
    %62 = arith.addf %61, %33 : vector<1x128xf32>
    %63 = arith.subf %62, %26 : vector<1x128xf32>
    %64 = arith.mulf %38, %63 : vector<1x128xf32>
    %65 = arith.addf %26, %64 : vector<1x128xf32>
    %66 = arith.mulf %36, %63 : vector<1x128xf32>
    %67 = arith.addf %26, %66 : vector<1x128xf32>
    %68 = arith.mulf %37, %63 : vector<1x128xf32>
    %69 = arith.addf %26, %68 : vector<1x128xf32>
    %70 = tpu.concatenate %65, %67, %69 in 0 : vector<1x128xf32>, vector<1x128xf32>, vector<1x128xf32> -> vector<3x128xf32>
    %71 = arith.truncf %70 : vector<3x128xf32> to vector<3x128xbf16>
    %c0_19 = arith.constant 0 : index
    %c0_20 = arith.constant 0 : index
    %c0_21 = arith.constant 0 : index
    %72 = vector.load %arg4[%c0_19, %c0_20, %c0_21] : memref<2x128x384xbf16, #tpu.memory_space<vmem>>, vector<1x128x384xbf16>
    %73 = vector.shape_cast %72 : vector<1x128x384xbf16> to vector<128x384xbf16>
    %cst_22 = arith.constant dense<0.000000e+00> : vector<3x384xf32>
    %74 = tpu.matmul %71, %73, %cst_22 {dimension_numbers = #tpu.dot_dimension_numbers<[1], [0], [0], [1], [0, 0, 1, 1], [], []>} : vector<3x128xbf16>, vector<128x384xbf16>, vector<3x384xf32> -> vector<3x384xf32>
    %75 = vector.extract_strided_slice %74 {offsets = [0, 0], sizes = [1, 128], strides = [1, 1]} : vector<3x384xf32> to vector<1x128xf32>
    %76 = arith.negf %75 : vector<1x128xf32>
    %77 = math.exp %76 : vector<1x128xf32>
    %cst_23 = arith.constant 1.000000e+00 : f32
    %78 = vector.broadcast %cst_23 : f32 to vector<1x128xf32>
    %79 = arith.addf %78, %77 : vector<1x128xf32>
    %80 = arith.divf %78, %79 : vector<1x128xf32>
    %81 = vector.extract_strided_slice %74 {offsets = [1, 128], sizes = [1, 128], strides = [1, 1]} : vector<3x384xf32> to vector<1x128xf32>
    %82 = vector.extract_strided_slice %74 {offsets = [2, 256], sizes = [1, 128], strides = [1, 1]} : vector<3x384xf32> to vector<1x128xf32>
    %83 = arith.addf %39, %81 : vector<1x128xf32>
    %84 = arith.maximumf %29, %83 : vector<1x128xf32>
    %85 = arith.subf %29, %84 : vector<1x128xf32>
    %86 = math.exp %85 : vector<1x128xf32>
    %87 = arith.subf %83, %84 : vector<1x128xf32>
    %88 = math.exp %87 : vector<1x128xf32>
    %89 = arith.mulf %86, %27 : vector<1x128xf32>
    %90 = arith.mulf %88, %82 : vector<1x128xf32>
    %91 = arith.addf %89, %90 : vector<1x128xf32>
    %92 = arith.mulf %86, %28 : vector<1x128xf32>
    %93 = arith.addf %92, %88 : vector<1x128xf32>
    %94 = arith.divf %91, %93 : vector<1x128xf32>
    %95 = arith.addf %29, %40 : vector<1x128xf32>
    %96 = arith.maximumf %95, %81 : vector<1x128xf32>
    %97 = arith.subf %95, %96 : vector<1x128xf32>
    %98 = math.exp %97 : vector<1x128xf32>
    %99 = arith.subf %81, %96 : vector<1x128xf32>
    %100 = math.exp %99 : vector<1x128xf32>
    %101 = arith.mulf %98, %27 : vector<1x128xf32>
    %102 = arith.mulf %100, %82 : vector<1x128xf32>
    %103 = arith.addf %101, %102 : vector<1x128xf32>
    %104 = arith.mulf %98, %28 : vector<1x128xf32>
    %105 = arith.addf %104, %100 : vector<1x128xf32>
    %106 = arith.mulf %80, %94 : vector<1x128xf32>
    %107 = arith.truncf %106 : vector<1x128xf32> to vector<1x128xbf16>
    %c0_24 = arith.constant 0 : index
    %c0_25 = arith.constant 0 : index
    %c0_26 = arith.constant 0 : index
    %108 = vector.load %arg5[%c0_24, %c0_25, %c0_26] : memref<2x128x128xbf16, #tpu.memory_space<vmem>>, vector<1x128x128xbf16>
    %109 = vector.shape_cast %108 : vector<1x128x128xbf16> to vector<128x128xbf16>
    %cst_27 = arith.constant dense<0.000000e+00> : vector<1x128xf32>
    %110 = tpu.matmul %107, %109, %cst_27 {dimension_numbers = #tpu.dot_dimension_numbers<[1], [0], [0], [1], [0, 0, 1, 1], [], []>} : vector<1x128xbf16>, vector<128x128xbf16>, vector<1x128xf32> -> vector<1x128xf32>
    %111 = arith.addf %22, %110 : vector<1x128xf32>
    %cst_28 = arith.constant dense<0.000000e+00> : vector<1xf32>
    %112 = vector.multi_reduction <add>, %111, %cst_28 [1] : vector<1x128xf32> to vector<1xf32>
    %113 = vector.shape_cast %112 : vector<1xf32> to vector<1x1xf32>
    %cst_29 = arith.constant 1.280000e+02 : f32
    %114 = vector.broadcast %cst_29 : f32 to vector<1x1xf32>
    %115 = arith.divf %113, %114 : vector<1x1xf32>
    %116 = vector.broadcast %115 : vector<1x1xf32> to vector<1x128xf32>
    %117 = arith.subf %111, %116 : vector<1x128xf32>
    %118 = arith.mulf %117, %117 : vector<1x128xf32>
    %cst_30 = arith.constant dense<0.000000e+00> : vector<1xf32>
    %119 = vector.multi_reduction <add>, %118, %cst_30 [1] : vector<1x128xf32> to vector<1xf32>
    %120 = vector.shape_cast %119 : vector<1xf32> to vector<1x1xf32>
    %cst_31 = arith.constant 1.280000e+02 : f32
    %121 = vector.broadcast %cst_31 : f32 to vector<1x1xf32>
    %122 = arith.divf %120, %121 : vector<1x1xf32>
    %123 = vector.broadcast %115 : vector<1x1xf32> to vector<1x128xf32>
    %124 = arith.subf %111, %123 : vector<1x128xf32>
    %cst_32 = arith.constant 9.99999974E-6 : f32
    %125 = vector.broadcast %cst_32 : f32 to vector<1x1xf32>
    %126 = arith.addf %122, %125 : vector<1x1xf32>
    %127 = math.rsqrt %126 : vector<1x1xf32>
    %128 = vector.broadcast %127 : vector<1x1xf32> to vector<1x128xf32>
    %129 = arith.mulf %124, %128 : vector<1x128xf32>
    %130 = arith.mulf %129, %34 : vector<1x128xf32>
    %131 = arith.addf %130, %35 : vector<1x128xf32>
    %132 = arith.subf %131, %25 : vector<1x128xf32>
    %133 = arith.mulf %42, %132 : vector<1x128xf32>
    %134 = arith.addf %25, %133 : vector<1x128xf32>
    %135 = arith.mulf %41, %132 : vector<1x128xf32>
    %136 = arith.addf %25, %135 : vector<1x128xf32>
    %137 = tpu.concatenate %134, %136 in 0 : vector<1x128xf32>, vector<1x128xf32> -> vector<2x128xf32>
    %138 = arith.truncf %137 : vector<2x128xf32> to vector<2x128xbf16>
    %c0_33 = arith.constant 0 : index
    %c0_34 = arith.constant 0 : index
    %c0_35 = arith.constant 0 : index
    %139 = vector.load %arg6[%c0_33, %c0_34, %c0_35] : memref<2x128x640xbf16, #tpu.memory_space<vmem>>, vector<1x128x640xbf16>
    %140 = vector.shape_cast %139 : vector<1x128x640xbf16> to vector<128x640xbf16>
    %cst_36 = arith.constant dense<0.000000e+00> : vector<2x640xf32>
    %141 = tpu.matmul %138, %140, %cst_36 {dimension_numbers = #tpu.dot_dimension_numbers<[1], [0], [0], [1], [0, 0, 1, 1], [], []>} : vector<2x128xbf16>, vector<128x640xbf16>, vector<2x640xf32> -> vector<2x640xf32>
    %142 = vector.extract_strided_slice %141 {offsets = [0, 0], sizes = [1, 128], strides = [1, 1]} : vector<2x640xf32> to vector<1x128xf32>
    %143 = arith.negf %142 : vector<1x128xf32>
    %144 = math.exp %143 : vector<1x128xf32>
    %cst_37 = arith.constant 1.000000e+00 : f32
    %145 = vector.broadcast %cst_37 : f32 to vector<1x128xf32>
    %146 = arith.addf %145, %144 : vector<1x128xf32>
    %147 = arith.divf %145, %146 : vector<1x128xf32>
    %148 = vector.extract_strided_slice %141 {offsets = [1, 128], sizes = [1, 512], strides = [1, 1]} : vector<2x640xf32> to vector<1x512xf32>
    %cst_38 = arith.constant 0.000000e+00 : f32
    %149 = vector.broadcast %cst_38 : f32 to vector<1x512xf32>
    %150 = arith.maximumf %148, %149 : vector<1x512xf32>
    %151 = arith.mulf %150, %150 : vector<1x512xf32>
    %152 = arith.truncf %151 : vector<1x512xf32> to vector<1x512xbf16>
    %c0_39 = arith.constant 0 : index
    %c0_40 = arith.constant 0 : index
    %c0_41 = arith.constant 0 : index
    %153 = vector.load %arg7[%c0_39, %c0_40, %c0_41] : memref<2x512x128xbf16, #tpu.memory_space<vmem>>, vector<1x512x128xbf16>
    %154 = vector.shape_cast %153 : vector<1x512x128xbf16> to vector<512x128xbf16>
    %cst_42 = arith.constant dense<0.000000e+00> : vector<1x128xf32>
    %155 = tpu.matmul %152, %154, %cst_42 {dimension_numbers = #tpu.dot_dimension_numbers<[1], [0], [0], [1], [0, 0, 1, 1], [], []>} : vector<1x512xbf16>, vector<512x128xbf16>, vector<1x128xf32> -> vector<1x128xf32>
    %156 = arith.mulf %147, %155 : vector<1x128xf32>
    %157 = arith.addf %111, %156 : vector<1x128xf32>
    %158 = tpu.concatenate %131, %62, %103, %105, %96 in 0 : vector<1x128xf32>, vector<1x128xf32>, vector<1x128xf32>, vector<1x128xf32>, vector<1x128xf32> -> vector<5x128xf32>
    %c0_43 = arith.constant 0 : index
    %c0_44 = arith.constant 0 : index
    %c0_45 = arith.constant 0 : index
    %159 = vector.load %arg10[%c0_43, %c0_44, %c0_45] : memref<2x5x128xf32, #tpu.memory_space<vmem>>, vector<1x5x128xf32>
    %160 = vector.shape_cast %159 : vector<1x5x128xf32> to vector<5x128xf32>
    %161 = vector.shape_cast %158 : vector<5x128xf32> to vector<1x5x128xf32>
    tpu.vector_store %arg10[%c0_43, %c0_44, %c0_45], %161 {strides = array<i32>} : memref<2x5x128xf32, #tpu.memory_space<vmem>>, vector<1x5x128xf32>,
    %c1_46 = arith.constant 1 : index
    %c0_47 = arith.constant 0 : index
    %c0_48 = arith.constant 0 : index
    %162 = vector.load %arg3[%c1_46, %c0_47, %c0_48] : memref<2x5x128xf32, #tpu.memory_space<vmem>>, vector<1x5x128xf32>
    %163 = vector.shape_cast %162 : vector<1x5x128xf32> to vector<5x128xf32>
    %164 = vector.extract_strided_slice %163 {offsets = [0, 0], sizes = [1, 128], strides = [1, 1]} : vector<5x128xf32> to vector<1x128xf32>
    %165 = vector.extract_strided_slice %163 {offsets = [1, 0], sizes = [1, 128], strides = [1, 1]} : vector<5x128xf32> to vector<1x128xf32>
    %166 = vector.extract_strided_slice %163 {offsets = [2, 0], sizes = [1, 128], strides = [1, 1]} : vector<5x128xf32> to vector<1x128xf32>
    %167 = vector.extract_strided_slice %163 {offsets = [3, 0], sizes = [1, 128], strides = [1, 1]} : vector<5x128xf32> to vector<1x128xf32>
    %168 = vector.extract_strided_slice %163 {offsets = [4, 0], sizes = [1, 128], strides = [1, 1]} : vector<5x128xf32> to vector<1x128xf32>
    %c1_49 = arith.constant 1 : index
    %c0_50 = arith.constant 0 : index
    %c0_51 = arith.constant 0 : index
    %169 = vector.load %arg2[%c1_49, %c0_50, %c0_51] : memref<2x11x128xf32, #tpu.memory_space<vmem>>, vector<1x11x128xf32>
    %170 = vector.shape_cast %169 : vector<1x11x128xf32> to vector<11x128xf32>
    %171 = vector.extract_strided_slice %170 {offsets = [0, 0], sizes = [1, 128], strides = [1, 1]} : vector<11x128xf32> to vector<1x128xf32>
    %172 = vector.extract_strided_slice %170 {offsets = [1, 0], sizes = [1, 128], strides = [1, 1]} : vector<11x128xf32> to vector<1x128xf32>
    %173 = vector.extract_strided_slice %170 {offsets = [2, 0], sizes = [1, 128], strides = [1, 1]} : vector<11x128xf32> to vector<1x128xf32>
    %174 = vector.extract_strided_slice %170 {offsets = [3, 0], sizes = [1, 128], strides = [1, 1]} : vector<11x128xf32> to vector<1x128xf32>
    %175 = vector.extract_strided_slice %170 {offsets = [4, 0], sizes = [1, 128], strides = [1, 1]} : vector<11x128xf32> to vector<1x128xf32>
    %176 = vector.extract_strided_slice %170 {offsets = [5, 0], sizes = [1, 128], strides = [1, 1]} : vector<11x128xf32> to vector<1x128xf32>
    %177 = vector.extract_strided_slice %170 {offsets = [6, 0], sizes = [1, 128], strides = [1, 1]} : vector<11x128xf32> to vector<1x128xf32>
    %178 = vector.extract_strided_slice %170 {offsets = [7, 0], sizes = [1, 128], strides = [1, 1]} : vector<11x128xf32> to vector<1x128xf32>
    %179 = vector.extract_strided_slice %170 {offsets = [8, 0], sizes = [1, 128], strides = [1, 1]} : vector<11x128xf32> to vector<1x128xf32>
    %180 = vector.extract_strided_slice %170 {offsets = [9, 0], sizes = [1, 128], strides = [1, 1]} : vector<11x128xf32> to vector<1x128xf32>
    %181 = vector.extract_strided_slice %170 {offsets = [10, 0], sizes = [1, 128], strides = [1, 1]} : vector<11x128xf32> to vector<1x128xf32>
    %cst_52 = arith.constant dense<0.000000e+00> : vector<1xf32>
    %182 = vector.multi_reduction <add>, %157, %cst_52 [1] : vector<1x128xf32> to vector<1xf32>
    %183 = vector.shape_cast %182 : vector<1xf32> to vector<1x1xf32>
    %cst_53 = arith.constant 1.280000e+02 : f32
    %184 = vector.broadcast %cst_53 : f32 to vector<1x1xf32>
    %185 = arith.divf %183, %184 : vector<1x1xf32>
    %186 = vector.broadcast %185 : vector<1x1xf32> to vector<1x128xf32>
    %187 = arith.subf %157, %186 : vector<1x128xf32>
    %188 = arith.mulf %187, %187 : vector<1x128xf32>
    %cst_54 = arith.constant dense<0.000000e+00> : vector<1xf32>
    %189 = vector.multi_reduction <add>, %188, %cst_54 [1] : vector<1x128xf32> to vector<1xf32>
    %190 = vector.shape_cast %189 : vector<1xf32> to vector<1x1xf32>
    %cst_55 = arith.constant 1.280000e+02 : f32
    %191 = vector.broadcast %cst_55 : f32 to vector<1x1xf32>
    %192 = arith.divf %190, %191 : vector<1x1xf32>
    %193 = vector.broadcast %185 : vector<1x1xf32> to vector<1x128xf32>
    %194 = arith.subf %157, %193 : vector<1x128xf32>
    %cst_56 = arith.constant 9.99999974E-6 : f32
    %195 = vector.broadcast %cst_56 : f32 to vector<1x1xf32>
    %196 = arith.addf %192, %195 : vector<1x1xf32>
    %197 = math.rsqrt %196 : vector<1x1xf32>
    %198 = vector.broadcast %197 : vector<1x1xf32> to vector<1x128xf32>
    %199 = arith.mulf %194, %198 : vector<1x128xf32>
    %200 = arith.mulf %199, %171 : vector<1x128xf32>
    %201 = arith.addf %200, %172 : vector<1x128xf32>
    %202 = arith.subf %201, %165 : vector<1x128xf32>
    %203 = arith.mulf %177, %202 : vector<1x128xf32>
    %204 = arith.addf %165, %203 : vector<1x128xf32>
    %205 = arith.mulf %175, %202 : vector<1x128xf32>
    %206 = arith.addf %165, %205 : vector<1x128xf32>
    %207 = arith.mulf %176, %202 : vector<1x128xf32>
    %208 = arith.addf %165, %207 : vector<1x128xf32>
    %209 = tpu.concatenate %204, %206, %208 in 0 : vector<1x128xf32>, vector<1x128xf32>, vector<1x128xf32> -> vector<3x128xf32>
    %210 = arith.truncf %209 : vector<3x128xf32> to vector<3x128xbf16>
    %c1_57 = arith.constant 1 : index
    %c0_58 = arith.constant 0 : index
    %c0_59 = arith.constant 0 : index
    %211 = vector.load %arg4[%c1_57, %c0_58, %c0_59] : memref<2x128x384xbf16, #tpu.memory_space<vmem>>, vector<1x128x384xbf16>
    %212 = vector.shape_cast %211 : vector<1x128x384xbf16> to vector<128x384xbf16>
    %cst_60 = arith.constant dense<0.000000e+00> : vector<3x384xf32>
    %213 = tpu.matmul %210, %212, %cst_60 {dimension_numbers = #tpu.dot_dimension_numbers<[1], [0], [0], [1], [0, 0, 1, 1], [], []>} : vector<3x128xbf16>, vector<128x384xbf16>, vector<3x384xf32> -> vector<3x384xf32>
    %214 = vector.extract_strided_slice %213 {offsets = [0, 0], sizes = [1, 128], strides = [1, 1]} : vector<3x384xf32> to vector<1x128xf32>
    %215 = arith.negf %214 : vector<1x128xf32>
    %216 = math.exp %215 : vector<1x128xf32>
    %cst_61 = arith.constant 1.000000e+00 : f32
    %217 = vector.broadcast %cst_61 : f32 to vector<1x128xf32>
    %218 = arith.addf %217, %216 : vector<1x128xf32>
    %219 = arith.divf %217, %218 : vector<1x128xf32>
    %220 = vector.extract_strided_slice %213 {offsets = [1, 128], sizes = [1, 128], strides = [1, 1]} : vector<3x384xf32> to vector<1x128xf32>
    %221 = vector.extract_strided_slice %213 {offsets = [2, 256], sizes = [1, 128], strides = [1, 1]} : vector<3x384xf32> to vector<1x128xf32>
    %222 = arith.addf %178, %220 : vector<1x128xf32>
    %223 = arith.maximumf %168, %222 : vector<1x128xf32>
    %224 = arith.subf %168, %223 : vector<1x128xf32>
    %225 = math.exp %224 : vector<1x128xf32>
    %226 = arith.subf %222, %223 : vector<1x128xf32>
    %227 = math.exp %226 : vector<1x128xf32>
    %228 = arith.mulf %225, %166 : vector<1x128xf32>
    %229 = arith.mulf %227, %221 : vector<1x128xf32>
    %230 = arith.addf %228, %229 : vector<1x128xf32>
    %231 = arith.mulf %225, %167 : vector<1x128xf32>
    %232 = arith.addf %231, %227 : vector<1x128xf32>
    %233 = arith.divf %230, %232 : vector<1x128xf32>
    %234 = arith.addf %168, %179 : vector<1x128xf32>
    %235 = arith.maximumf %234, %220 : vector<1x128xf32>
    %236 = arith.subf %234, %235 : vector<1x128xf32>
    %237 = math.exp %236 : vector<1x128xf32>
    %238 = arith.subf %220, %235 : vector<1x128xf32>
    %239 = math.exp %238 : vector<1x128xf32>
    %240 = arith.mulf %237, %166 : vector<1x128xf32>
    %241 = arith.mulf %239, %221 : vector<1x128xf32>
    %242 = arith.addf %240, %241 : vector<1x128xf32>
    %243 = arith.mulf %237, %167 : vector<1x128xf32>
    %244 = arith.addf %243, %239 : vector<1x128xf32>
    %245 = arith.mulf %219, %233 : vector<1x128xf32>
    %246 = arith.truncf %245 : vector<1x128xf32> to vector<1x128xbf16>
    %c1_62 = arith.constant 1 : index
    %c0_63 = arith.constant 0 : index
    %c0_64 = arith.constant 0 : index
    %247 = vector.load %arg5[%c1_62, %c0_63, %c0_64] : memref<2x128x128xbf16, #tpu.memory_space<vmem>>, vector<1x128x128xbf16>
    %248 = vector.shape_cast %247 : vector<1x128x128xbf16> to vector<128x128xbf16>
    %cst_65 = arith.constant dense<0.000000e+00> : vector<1x128xf32>
    %249 = tpu.matmul %246, %248, %cst_65 {dimension_numbers = #tpu.dot_dimension_numbers<[1], [0], [0], [1], [0, 0, 1, 1], [], []>} : vector<1x128xbf16>, vector<128x128xbf16>, vector<1x128xf32> -> vector<1x128xf32>
    %250 = arith.addf %157, %249 : vector<1x128xf32>
    %cst_66 = arith.constant dense<0.000000e+00> : vector<1xf32>
    %251 = vector.multi_reduction <add>, %250, %cst_66 [1] : vector<1x128xf32> to vector<1xf32>
    %252 = vector.shape_cast %251 : vector<1xf32> to vector<1x1xf32>
    %cst_67 = arith.constant 1.280000e+02 : f32
    %253 = vector.broadcast %cst_67 : f32 to vector<1x1xf32>
    %254 = arith.divf %252, %253 : vector<1x1xf32>
    %255 = vector.broadcast %254 : vector<1x1xf32> to vector<1x128xf32>
    %256 = arith.subf %250, %255 : vector<1x128xf32>
    %257 = arith.mulf %256, %256 : vector<1x128xf32>
    %cst_68 = arith.constant dense<0.000000e+00> : vector<1xf32>
    %258 = vector.multi_reduction <add>, %257, %cst_68 [1] : vector<1x128xf32> to vector<1xf32>
    %259 = vector.shape_cast %258 : vector<1xf32> to vector<1x1xf32>
    %cst_69 = arith.constant 1.280000e+02 : f32
    %260 = vector.broadcast %cst_69 : f32 to vector<1x1xf32>
    %261 = arith.divf %259, %260 : vector<1x1xf32>
    %262 = vector.broadcast %254 : vector<1x1xf32> to vector<1x128xf32>
    %263 = arith.subf %250, %262 : vector<1x128xf32>
    %cst_70 = arith.constant 9.99999974E-6 : f32
    %264 = vector.broadcast %cst_70 : f32 to vector<1x1xf32>
    %265 = arith.addf %261, %264 : vector<1x1xf32>
    %266 = math.rsqrt %265 : vector<1x1xf32>
    %267 = vector.broadcast %266 : vector<1x1xf32> to vector<1x128xf32>
    %268 = arith.mulf %263, %267 : vector<1x128xf32>
    %269 = arith.mulf %268, %173 : vector<1x128xf32>
    %270 = arith.addf %269, %174 : vector<1x128xf32>
    %271 = arith.subf %270, %164 : vector<1x128xf32>
    %272 = arith.mulf %181, %271 : vector<1x128xf32>
    %273 = arith.addf %164, %272 : vector<1x128xf32>
    %274 = arith.mulf %180, %271 : vector<1x128xf32>
    %275 = arith.addf %164, %274 : vector<1x128xf32>
    %276 = tpu.concatenate %273, %275 in 0 : vector<1x128xf32>, vector<1x128xf32> -> vector<2x128xf32>
    %277 = arith.truncf %276 : vector<2x128xf32> to vector<2x128xbf16>
    %c1_71 = arith.constant 1 : index
    %c0_72 = arith.constant 0 : index
    %c0_73 = arith.constant 0 : index
    %278 = vector.load %arg6[%c1_71, %c0_72, %c0_73] : memref<2x128x640xbf16, #tpu.memory_space<vmem>>, vector<1x128x640xbf16>
    %279 = vector.shape_cast %278 : vector<1x128x640xbf16> to vector<128x640xbf16>
    %cst_74 = arith.constant dense<0.000000e+00> : vector<2x640xf32>
    %280 = tpu.matmul %277, %279, %cst_74 {dimension_numbers = #tpu.dot_dimension_numbers<[1], [0], [0], [1], [0, 0, 1, 1], [], []>} : vector<2x128xbf16>, vector<128x640xbf16>, vector<2x640xf32> -> vector<2x640xf32>
    %281 = vector.extract_strided_slice %280 {offsets = [0, 0], sizes = [1, 128], strides = [1, 1]} : vector<2x640xf32> to vector<1x128xf32>
    %282 = arith.negf %281 : vector<1x128xf32>
    %283 = math.exp %282 : vector<1x128xf32>
    %cst_75 = arith.constant 1.000000e+00 : f32
    %284 = vector.broadcast %cst_75 : f32 to vector<1x128xf32>
    %285 = arith.addf %284, %283 : vector<1x128xf32>
    %286 = arith.divf %284, %285 : vector<1x128xf32>
    %287 = vector.extract_strided_slice %280 {offsets = [1, 128], sizes = [1, 512], strides = [1, 1]} : vector<2x640xf32> to vector<1x512xf32>
    %cst_76 = arith.constant 0.000000e+00 : f32
    %288 = vector.broadcast %cst_76 : f32 to vector<1x512xf32>
    %289 = arith.maximumf %287, %288 : vector<1x512xf32>
    %290 = arith.mulf %289, %289 : vector<1x512xf32>
    %291 = arith.truncf %290 : vector<1x512xf32> to vector<1x512xbf16>
    %c1_77 = arith.constant 1 : index
    %c0_78 = arith.constant 0 : index
    %c0_79 = arith.constant 0 : index
    %292 = vector.load %arg7[%c1_77, %c0_78, %c0_79] : memref<2x512x128xbf16, #tpu.memory_space<vmem>>, vector<1x512x128xbf16>
    %293 = vector.shape_cast %292 : vector<1x512x128xbf16> to vector<512x128xbf16>
    %cst_80 = arith.constant dense<0.000000e+00> : vector<1x128xf32>
    %294 = tpu.matmul %291, %293, %cst_80 {dimension_numbers = #tpu.dot_dimension_numbers<[1], [0], [0], [1], [0, 0, 1, 1], [], []>} : vector<1x512xbf16>, vector<512x128xbf16>, vector<1x128xf32> -> vector<1x128xf32>
    %295 = arith.mulf %286, %294 : vector<1x128xf32>
    %296 = arith.addf %250, %295 : vector<1x128xf32>
    %297 = tpu.concatenate %270, %201, %242, %244, %235 in 0 : vector<1x128xf32>, vector<1x128xf32>, vector<1x128xf32>, vector<1x128xf32>, vector<1x128xf32> -> vector<5x128xf32>
    %c1_81 = arith.constant 1 : index
    %c0_82 = arith.constant 0 : index
    %c0_83 = arith.constant 0 : index
    %298 = vector.load %arg10[%c1_81, %c0_82, %c0_83] : memref<2x5x128xf32, #tpu.memory_space<vmem>>, vector<1x5x128xf32>
    %299 = vector.shape_cast %298 : vector<1x5x128xf32> to vector<5x128xf32>
    %300 = vector.shape_cast %297 : vector<5x128xf32> to vector<1x5x128xf32>
    tpu.vector_store %arg10[%c1_81, %c0_82, %c0_83], %300 {strides = array<i32>} : memref<2x5x128xf32, #tpu.memory_space<vmem>>, vector<1x5x128xf32>,
    %c2 = arith.constant 2 : index
    %c0_84 = arith.constant 0 : index
    %301 = vector.load %arg1[%c2, %c0_84] : memref<4x128xf32, #tpu.memory_space<vmem>>, vector<1x128xf32>
    %c3 = arith.constant 3 : index
    %c0_85 = arith.constant 0 : index
    %302 = vector.load %arg1[%c3, %c0_85] : memref<4x128xf32, #tpu.memory_space<vmem>>, vector<1x128xf32>
    %cst_86 = arith.constant dense<0.000000e+00> : vector<1xf32>
    %303 = vector.multi_reduction <add>, %296, %cst_86 [1] : vector<1x128xf32> to vector<1xf32>
    %304 = vector.shape_cast %303 : vector<1xf32> to vector<1x1xf32>
    %cst_87 = arith.constant 1.280000e+02 : f32
    %305 = vector.broadcast %cst_87 : f32 to vector<1x1xf32>
    %306 = arith.divf %304, %305 : vector<1x1xf32>
    %307 = vector.broadcast %306 : vector<1x1xf32> to vector<1x128xf32>
    %308 = arith.subf %296, %307 : vector<1x128xf32>
    %309 = arith.mulf %308, %308 : vector<1x128xf32>
    %cst_88 = arith.constant dense<0.000000e+00> : vector<1xf32>
    %310 = vector.multi_reduction <add>, %309, %cst_88 [1] : vector<1x128xf32> to vector<1xf32>
    %311 = vector.shape_cast %310 : vector<1xf32> to vector<1x1xf32>
    %cst_89 = arith.constant 1.280000e+02 : f32
    %312 = vector.broadcast %cst_89 : f32 to vector<1x1xf32>
    %313 = arith.divf %311, %312 : vector<1x1xf32>
    %314 = vector.broadcast %306 : vector<1x1xf32> to vector<1x128xf32>
    %315 = arith.subf %296, %314 : vector<1x128xf32>
    %cst_90 = arith.constant 9.99999974E-6 : f32
    %316 = vector.broadcast %cst_90 : f32 to vector<1x1xf32>
    %317 = arith.addf %313, %316 : vector<1x1xf32>
    %318 = math.rsqrt %317 : vector<1x1xf32>
    %319 = vector.broadcast %318 : vector<1x1xf32> to vector<1x128xf32>
    %320 = arith.mulf %315, %319 : vector<1x128xf32>
    %321 = arith.mulf %320, %301 : vector<1x128xf32>
    %322 = arith.addf %321, %302 : vector<1x128xf32>
    %323 = arith.truncf %322 : vector<1x128xf32> to vector<1x128xbf16>
    %c0_91 = arith.constant 0 : index
    %c0_92 = arith.constant 0 : index
    %324 = vector.load %arg8[%c0_91, %c0_92] : memref<128x256xbf16, #tpu.memory_space<vmem>>, vector<128x256xbf16>
    %cst_93 = arith.constant dense<0.000000e+00> : vector<1x256xf32>
    %325 = tpu.matmul %323, %324, %cst_93 {dimension_numbers = #tpu.dot_dimension_numbers<[1], [0], [0], [1], [0, 0, 1, 1], [], []>} : vector<1x128xbf16>, vector<128x256xbf16>, vector<1x256xf32> -> vector<1x256xf32>
    %c0_94 = arith.constant 0 : index
    %c0_95 = arith.constant 0 : index
    %326 = vector.load %arg9[%c0_94, %c0_95] : memref<1x256xf32, #tpu.memory_space<vmem>>, vector<1x256xf32>
    tpu.vector_store %arg9[%c0_94, %c0_95], %325 {strides = array<i32>} : memref<1x256xf32, #tpu.memory_space<vmem>>, vector<1x256xf32>,
    return
  }
}

</mosaic_0001>

<bundles_post_ra>
// kernel: rwkv_forward_pallas.1
= control target key start
LH: loop header
LB: loop body
LE: loop exit
PB: predicated region body
PF: predicated region fallthrough
CT: control target
= control target key end

     0   :  { %16 = vsyncpa [#allocation3], 0  ;;  %s4382_s0 = inlined_call_operand.vmem [shape: f32[1,128], index: 0, kind: input, shape index: {}]   ;;  %s4383_s1 = inlined_call_operand.vmem [shape: f32[4,128], index: 1, kind: input, shape index: {}]   ;;  %s4384_s2 = inlined_call_operand.vmem [shape: f32[2,11,128], index: 2, kind: input, shape index: {}]   ;;  %s4385_s3 = inlined_call_operand.vmem [shape: f32[2,5,128], index: 3, kind: input, shape index: {}]   ;;  %s4386_s4 = inlined_call_operand.hbm [shape: bf16[2,128,384], index: 4, kind: input, shape index: {}]   ;;  %s4387_s5 = inlined_call_operand.hbm [shape: bf16[2,128,128], index: 5, kind: input, shape index: {}]   ;;  %s4388_s6 = inlined_call_operand.hbm [shape: bf16[2,128,640], index: 6, kind: input, shape index: {}]   ;;  %s4389_s7 = inlined_call_operand.hbm [shape: bf16[2,512,128], index: 7, kind: input, shape index: {}]   ;;  %s4390_s8 = inlined_call_operand.hbm [shape: bf16[128,256], index: 8, kind: input, shape index: {}]   ;;  %s4391_s9 = inlined_call_operand.hbm [shape: f32[1,256], index: 9, kind: output, shape index: {0}]   ;;  %s4392_s10 = inlined_call_operand.vmem [shape: f32[2,5,128], index: 10, kind: output, shape index: {1}]  }
   0x1   :  { %17 = vsyncpa [#allocation6], 0 }
   0x2   :  { %18 = vsyncpa [#allocation9], 0 }
   0x3   :  { %19 = vsyncpa [#allocation4], 0  ;;  %s3943_s13 = smov [#allocation5]   ;;  %s3803_s17 = scalar_lea.hbm %s4387_s5, 2048 }
   0x4   :  { %s45_s14 = sshll.u32 %s3943_s13, 4  ;;  %p3804_p0 = scmp.ne.s32.totalorder %s4387_s5, %s3803_s17  ;;  %s46_s14 = int_to_ptr.vmem [resolvable:$true] %s45_s14 }
   0x5   :  { %p3807_p1 = scmp.lt.u32.totalorder %s3803_s17, %s4387_s5 }
   0x7   :  { %p3809_p2 = pnand %p3807_p1, %p3804_p0 }
   0x9   :  { %3812 = shalt.err (!%p3809_p2)
}
   0xa   :  { %s3813_s22 = scalar_lea.vmem %s46_s14, 2048  ;;  %p3818_p4 = scmp.lt.s32.totalorder %s46_s14, %s46_s14 }
   0xb   :  { %p3814_p3 = scmp.ne.s32.totalorder %s46_s14, %s3813_s22  ;;  %p3819_p5 = scmp.lt.s32.totalorder %s3813_s22, %s3813_s22 }
   0xd   :  { %p3820_p6 = por %p3819_p5, %p3818_p4 }
   0xf   :  { %p3821_p7 = pnand %p3820_p6, %p3814_p3 }
  0x11   :  { %3824 = shalt.err (!%p3821_p7)
}
  0x12   :  { %s3944_s23 = smov 64   ;;  %s3945_s24 = smov 4  }
  0x13   :  { %51 = dma.hbm_to_vmem [thread:$0]  %s4387_s5, 2048, %s46_s14, [#allocation6], %s3944_s23, %s3944_s23, %s3945_s24  }
  0x14   :  { %s3946_s27 = smov [#allocation8]   ;;  %s3947_s29 = smov [#allocation2]  }
  0x15   :  { %s69_s28 = sshll.u32 %s3946_s27, 4  ;;  %s33_s30 = sshll.u32 %s3947_s29, 4  ;;  %s70_s28 = int_to_ptr.vmem [resolvable:$true] %s69_s28  ;;  %s34_s30 = int_to_ptr.vmem [resolvable:$true] %s33_s30 }
  0x16   :  { %s3825_s13 = scalar_lea.hbm %s4389_s7, 8192 }
  0x17   :  { %p3826_p8 = scmp.ne.s32.totalorder %s4389_s7, %s3825_s13  ;;  %p3829_p9 = scmp.lt.u32.totalorder %s3825_s13, %s4389_s7 }
  0x19   :  { %p3831_p10 = pnand %p3829_p9, %p3826_p8 }
  0x1b   :  { %3834 = shalt.err (!%p3831_p10)
}
  0x1c   :  { %s3835_s5 = scalar_lea.vmem %s70_s28, 8192  ;;  %p3840_p12 = scmp.lt.s32.totalorder %s70_s28, %s70_s28 }
  0x1d   :  { %p3836_p11 = scmp.ne.s32.totalorder %s70_s28, %s3835_s5  ;;  %p3841_p13 = scmp.lt.s32.totalorder %s3835_s5, %s3835_s5 }
  0x1f   :  { %p3842_p0 = por %p3841_p13, %p3840_p12 }
  0x21   :  { %p3843_p1 = pnand %p3842_p0, %p3836_p11 }
  0x23   :  { %3846 = shalt.err (!%p3843_p1)
}
  0x24   :  { %75 = dma.hbm_to_vmem [thread:$0]  %s4389_s7, 8192, %s70_s28, [#allocation9], %s3944_s23, %s3944_s23, %s3945_s24  }
  0x25   :  { %s3847_s22 = scalar_lea.hbm %s4386_s4, 6144 }
  0x26   :  { %p3848_p2 = scmp.ne.s32.totalorder %s4386_s4, %s3847_s22  ;;  %p3851_p3 = scmp.lt.u32.totalorder %s3847_s22, %s4386_s4 }
  0x28   :  { %p3853_p4 = pnand %p3851_p3, %p3848_p2 }
  0x2a   :  { %3856 = shalt.err (!%p3853_p4)
}
  0x2b   :  { %s3857_s11 = scalar_lea.vmem %s34_s30, 6144  ;;  %p3862_p6 = scmp.lt.s32.totalorder %s34_s30, %s34_s30 }
  0x2c   :  { %p3858_p5 = scmp.ne.s32.totalorder %s34_s30, %s3857_s11  ;;  %p3863_p7 = scmp.lt.s32.totalorder %s3857_s11, %s3857_s11 }
  0x2e   :  { %p3864_p8 = por %p3863_p7, %p3862_p6 }
  0x30   :  { %p3865_p9 = pnand %p3864_p8, %p3858_p5 }
  0x32   :  { %3868 = shalt.err (!%p3865_p9)
}
  0x33   :  { %s3948_s7 = smov 192   ;;  %s3949_s23 = smov 12  }
  0x34   :  { %39 = dma.hbm_to_vmem [thread:$0]  %s4386_s4, 6144, %s34_s30, [#allocation3], %s3948_s7, %s3948_s7, %s3949_s23  }
  0x35   :  { %s3950_s12 = smov [#allocation7]   ;;  %s3869_s17 = scalar_lea.hbm %s4388_s6, 10240 }
  0x36   :  { %s57_s13 = sshll.u32 %s3950_s12, 4  ;;  %p3870_p10 = scmp.ne.s32.totalorder %s4388_s6, %s3869_s17  ;;  %s58_s13 = int_to_ptr.vmem [resolvable:$true] %s57_s13 }
  0x37   :  { %p3873_p11 = scmp.lt.u32.totalorder %s3869_s17, %s4388_s6 }
  0x39   :  { %p3875_p12 = pnand %p3873_p11, %p3870_p10 }
  0x3b   :  { %3878 = shalt.err (!%p3875_p12)
}
  0x3c   :  { %s3879_s20 = scalar_lea.vmem %s58_s13, 10240  ;;  %p3884_p0 = scmp.lt.s32.totalorder %s58_s13, %s58_s13 }
  0x3d   :  { %p3880_p13 = scmp.ne.s32.totalorder %s58_s13, %s3879_s20  ;;  %p3885_p1 = scmp.lt.s32.totalorder %s3879_s20, %s3879_s20 }
  0x3f   :  { %p3886_p2 = por %p3885_p1, %p3884_p0 }
  0x41   :  { %p3887_p3 = pnand %p3886_p2, %p3880_p13 }
  0x43   :  { %3890 = shalt.err (!%p3887_p3)
}
  0x44   :  { %s3951_s4 = smov 320   ;;  %s3952_s30 = smov 20  }
  0x45   :  { %63 = dma.hbm_to_vmem [thread:$0]  %s4388_s6, 10240, %s58_s13, [#allocation6], %s3951_s4, %s3951_s4, %s3952_s30  }
  0x46   :  { %s3953_s25 = smov [#allocation10]   ;;  %s3891_s11 = scalar_lea.hbm %s4390_s8, 2048 }
  0x47   :  { %s81_s26 = sshll.u32 %s3953_s25, 4  ;;  %p3892_p4 = scmp.ne.s32.totalorder %s4390_s8, %s3891_s11  ;;  %s82_s26 = int_to_ptr.vmem [resolvable:$true] %s81_s26 }
  0x48   :  { %p3895_p5 = scmp.lt.u32.totalorder %s3891_s11, %s4390_s8 }
  0x4a   :  { %p3897_p6 = pnand %p3895_p5, %p3892_p4 }
  0x4c   :  { %3900 = shalt.err (!%p3897_p6)
}
  0x4d   :  { %s3901_s12 = scalar_lea.vmem %s82_s26, 2048  ;;  %p3906_p8 = scmp.lt.s32.totalorder %s82_s26, %s82_s26 }
  0x4e   :  { %p3902_p7 = scmp.ne.s32.totalorder %s82_s26, %s3901_s12  ;;  %p3907_p9 = scmp.lt.s32.totalorder %s3901_s12, %s3901_s12 }
  0x50   :  { %p3908_p10 = por %p3907_p9, %p3906_p8 }
  0x52   :  { %p3909_p11 = pnand %p3908_p10, %p3902_p7 }
  0x54   :  { %3912 = shalt.err (!%p3909_p11)
}
  0x55   :  { %s3954_s6 = smov 128   ;;  %s3955_s13 = smov 8  }
  0x56   :  { %87 = dma.hbm_to_vmem [thread:$0]  %s4390_s8, 2048, %s82_s26, [#allocation9], %s3954_s6, %s3954_s6, %s3955_s13  }
  0x57   :  { %3935 = dma.done.wait [#allocation3], 6144  }
  0x58   :  { %3936 = vsyncadd [#allocation3], 4294961152 }
  0x59   :  { %3937 = dma.done.wait [#allocation6], 12288  }
  0x5a   :  { %3938 = vsyncadd [#allocation6], 4294955008 }
  0x5b   :  { %3939 = dma.done.wait [#allocation9], 10240  }
  0x5c   :  { %3940 = vsyncadd [#allocation9], 4294957056  ;;  %vm107_vm0 = vcmask 1040384   ;;  %v104_v0 = vld [vmem:[%s4382_s0] sm:$0x1]  ;;  %v3956_v25 = vmov 0.0   ;;  %v145_v50 = vlaneseq }
  0x5d   :  { %v108_v1 = vsel %vm107_vm0, %v104_v0, 0.0  ;;  %v105_v11 = vld [vmem:[%s4383_s1] sm:$0x1]  ;;  %v106_v13 = vld [vmem:[%s4383_s1 + $0x1] sm:$0x1]  ;;  %3337 = vmatprep.subr.bf16.mxu1 %v3956_v25  ;;  %v3957_v42 = vmov 0  }
  0x5e   :  { %109 = vadd.xlane.f32.xlu0 %v108_v1  ;;  %v3475_v22 = vld [vmem:[#allocation2 + $0x4] ss:$12 sps:$4 sm:$0xff]   ;;  %v3477_v23 = vld [vmem:[#allocation2] ss:$12 sps:$4 sm:$0xff]   ;;  %v3478_v24 = vld [vmem:[#allocation2 + $0x8] ss:$12 sps:$4 sm:$0xff]   ;;  %403 = vmatprep.mubr.bf16.mxu0 %v3957_v42 }
  0x5f   :  { %371 = vmatprep.subr.bf16.mxu0 %v3475_v22  ;;  %3338 = vmatpush3.bf16.msra.mxu1 %v3478_v24  ;;  %v3479_v26 = vld [vmem:[#allocation2 + $0x1c] ss:$12 sps:$4 sm:$0xff]   ;;  %v3481_v27 = vld [vmem:[#allocation2 + $0x18] ss:$12 sps:$4 sm:$0xff]   ;;  %v3482_v28 = vld [vmem:[#allocation2 + $0x20] ss:$12 sps:$4 sm:$0xff]  }
  0x60   :  { %372 = vmatpush1.bf16.msra.mxu0 %v3477_v23  ;;  %3339 = vmatprep.subr.bf16.mxu1 %v3956_v25  ;;  %v3483_v29 = vld [vmem:[#allocation2 + $0x34] ss:$12 sps:$4 sm:$0xff]   ;;  %v3485_v30 = vld [vmem:[#allocation2 + $0x30] ss:$12 sps:$4 sm:$0xff]   ;;  %v3486_v31 = vld [vmem:[#allocation2 + $0x38] ss:$12 sps:$4 sm:$0xff]  }
  0x61   :  { %373 = vmatprep.subr.bf16.mxu0 %v3479_v26  ;;  %v3487_v32 = vld [vmem:[#allocation2 + $0x4c] ss:$12 sps:$4 sm:$0xff]   ;;  %v3489_v33 = vld [vmem:[#allocation2 + $0x48] ss:$12 sps:$4 sm:$0xff]   ;;  %v3490_v34 = vld [vmem:[#allocation2 + $0x50] ss:$12 sps:$4 sm:$0xff]  }
  0x62   :  { %v3491_v35 = vld [vmem:[#allocation2 + $0x64] ss:$12 sps:$4 sm:$0xff]   ;;  %v3493_v36 = vld [vmem:[#allocation2 + $0x60] ss:$12 sps:$4 sm:$0xff]   ;;  %v3494_v37 = vld [vmem:[#allocation2 + $0x68] ss:$12 sps:$4 sm:$0xff]  }
  0x63   :  { %3340 = vmatpush3.bf16.msra.mxu1 %v3482_v28  ;;  %v3495_v38 = vld [vmem:[#allocation2 + $0x7c] ss:$12 sps:$4 sm:$0xff]   ;;  %v3497_v39 = vld [vmem:[#allocation2 + $0x78] ss:$12 sps:$4 sm:$0xff]   ;;  %v3498_v40 = vld [vmem:[#allocation2 + $0x80] ss:$12 sps:$4 sm:$0xff]  }
  0x64   :  { %374 = vmatpush1.bf16.msra.mxu0 %v3481_v27  ;;  %3341 = vmatprep.subr.bf16.mxu1 %v3956_v25  ;;  %v3499_v41 = vld [vmem:[#allocation2 + $0x94] ss:$12 sps:$4 sm:$0xff]   ;;  %vm3958_vm1 = vmmov 0   ;;  %v3501_v43 = vld [vmem:[#allocation2 + $0x90] ss:$12 sps:$4 sm:$0xff]   ;;  %v146_v52 = vshrl.u32 %v145_v50, 7 }
  0x65   :  { %375 = vmatprep.subr.bf16.mxu0 %v3483_v29  ;;  %3353 = vmatprep.mubr.msk.bf16.mxu1 %vm3958_vm1, %v3956_v25  ;;  %v3502_v44 = vld [vmem:[#allocation2 + $0x98] ss:$12 sps:$4 sm:$0xff]   ;;  %v3505_v46 = vld [vmem:[#allocation2 + $0xa8] ss:$12 sps:$4 sm:$0xff]   ;;  %v3506_v47 = vld [vmem:[#allocation2 + $0xb0] ss:$12 sps:$4 sm:$0xff]  }
  0x66   :  { %v3503_v45 = vld [vmem:[#allocation2 + $0xac] ss:$12 sps:$4 sm:$0xff]   ;;  %v3959_v48 = vmov 1966171168   ;;  %v4115_v57 = vld [vmem:[%s4384_s2] sm:$0xff]  ;;  %vm208_vm2 = vcmask 1041408  }
  0x67   :  { %3342 = vmatpush3.bf16.msra.mxu1 %v3486_v31  ;;  %v143_v49 = vunpack.c.l.s4 %v3959_v48  ;;  %v4120_v58 = vld [vmem:[%s4385_s3] sm:$0x1f]  ;;  %v3508_v22 = vld [vmem:[#allocation5 + $0x8] sm:$0xff]   ;;  %v3509_v23 = vld [vmem:[#allocation5 + $0x10] sm:$0xff]   ;;  %vm1437_vm3 = vcmask 1042432   ;;  %vm1439_vm4 = vcmask 1043456  }
  0x68   :  { %376 = vmatpush1.bf16.msra.mxu0 %v3485_v30  ;;  %3343 = vmatprep.subr.bf16.mxu1 %v3956_v25  ;;  %v3510_v24 = vld [vmem:[#allocation5 + $0x18] sm:$0xff]   ;;  %v3511_v26 = vld [vmem:[#allocation5 + $0x20] sm:$0xff]   ;;  %v3512_v27 = vld [vmem:[#allocation5 + $0x28] sm:$0xff]   ;;  %s3960_s13 = smov [#allocation11]   ;;  %vm2939_vm5 = vcmp.lt.s32.totalorder %v145_v50, 256 }
  0x69   :  { %377 = vmatprep.subr.bf16.mxu0 %v3487_v32  ;;  %v144_v51 = vunpack.c.0.s8 %v143_v49  ;;  %v3513_v28 = vld [vmem:[#allocation5 + $0x30] sm:$0xff]   ;;  %v3514_v29 = vld [vmem:[#allocation5 + $0x38] sm:$0xff]   ;;  %v4162_v30 = vld [vmem:[%s4384_s2 + $0x8] sm:$0x7]  ;;  %s2948_s15 = sshll.u32 %s3960_s13, 4  ;;  %s2949_s15 = int_to_ptr.vmem [resolvable:$true] %s2948_s15 }
  0x6a   :  { %v496_v31 = vrot.slane %v4162_v30, 4  ;;  %p3918_p13 = scmp.lt.s32.totalorder %s2949_s15, %s2949_s15 }
  0x6b   :  { %3344 = vmatpush3.bf16.msra.mxu1 %v3490_v34  ;;  %v4110_v56 = vsub.s32 %v144_v51, %v146_v52 }
  0x6c   :  { %378 = vmatpush1.bf16.msra.mxu0 %v3489_v33  ;;  %3345 = vmatprep.subr.bf16.mxu1 %v3956_v25  ;;  %v498_v34 = vadd.f32 %v496_v31, %v4120_v58 }
  0x6d   :  { %379 = vmatprep.subr.bf16.mxu0 %v3491_v35  ;;  %v4124_v59 = vrot.slane %v4115_v57, %v4110_v56  ;;  %v173_v60 = vrot.slane %v4120_v58, %v4110_v56 }
  0x6f   :  { %3346 = vmatpush3.bf16.msra.mxu1 %v3494_v37  ;;  %v149_v61 = vcombine.high %v4124_v59, %v4124_v59  ;;  %v174_v62 = vcombine.high %v173_v60, %v173_v60 }
  0x70   :  { %380 = vmatpush1.bf16.msra.mxu0 %v3493_v36  ;;  %3347 = vmatprep.subr.bf16.mxu1 %v3956_v25 }
  0x71   :  { %381 = vmatprep.subr.bf16.mxu0 %v3495_v38 }
  0x73   :  { %3348 = vmatpush3.bf16.msra.mxu1 %v3498_v40 }
  0x74   :  { %382 = vmatpush1.bf16.msra.mxu0 %v3497_v39  ;;  %3349 = vmatprep.subr.bf16.mxu1 %v3956_v25 }
  0x75   :  { %383 = vmatprep.subr.bf16.mxu0 %v3499_v41 }
  0x77   :  { %3350 = vmatpush3.bf16.msra.mxu1 %v3502_v44 }
  0x78   :  { %384 = vmatpush1.bf16.msra.mxu0 %v3501_v43  ;;  %3351 = vmatprep.subr.bf16.mxu1 %v3956_v25 }
  0x79   :  { %385 = vmatprep.subr.bf16.mxu0 %v3503_v45 }
  0x7b   :  { %3352 = vmatpush3.bf16.msra.mxu1 %v3506_v47 }
  0x7c   :  { %386 = vmatpush1.bf16.msra.mxu0 %v3505_v46 }
  0x7d   :  { %3357 = vmatprep.subr.bf16.mxu0 %v3956_v25 }
  0xeb   :  { %v110_v2 = vpop.xlane.xlu0 %109 }
  0xec   :  { %v112_v3 = vmul.f32 0.0078125, %v110_v2  ;;  %v181_v2 = vrot.slane %v174_v62, %v4110_v56 }
  0xee   :  { %v113_v4 = vsub.f32 %v104_v0, %v112_v3  ;;  %v4131_v0 = vrot.slane %v149_v61, %v4110_v56 }
  0xf0   :  { %v114_v5 = vmul.f32 %v113_v4, %v113_v4 }
  0xf2   :  { %v115_v6 = vsel %vm107_vm0, %v114_v5, 0.0  ;;  %v4139_v5 = vsub.s32 0, %v146_v52 }
  0xf3   :  { %116 = vadd.xlane.f32.xlu0 %v115_v6 }
 0x180   :  { %v117_v7 = vpop.xlane.xlu0 %116 }
 0x181   :  { %v118_v8 = vmul.f32 0.0078125, %v117_v7 }
 0x183   :  { %v119_v9 = vadd.f32 1e-05, %v118_v8 }
 0x185   :  { %3755 = vrsqrt.f32 %v119_v9 }
 0x18f   :  { %v3756_v10 = vpop.eup %3755 }
 0x190   :  { %v121_v12 = vmul.f32 %v3756_v10, %v113_v4 }
 0x192   :  { %v122_v14 = vmul.f32 %v121_v12, %v105_v11 }
 0x194   :  { %v4087_v15 = vadd.f32 %v122_v14, %v106_v13 }
 0x196   :  { %v127_v16 = vsel %vm107_vm0, %v4087_v15, 0.0 }
 0x197   :  { %128 = vadd.xlane.f32.xlu1 %v127_v16 }
 0x224   :  { %v129_v17 = vpop.xlane.xlu1 %128 }
 0x225   :  { %v130_v18 = vmul.f32 0.0078125, %v129_v17 }
 0x227   :  { %v4092_v19 = vsub.f32 %v4087_v15, %v130_v18 }
 0x229   :  { %v132_v20 = vmul.f32 %v4092_v19, %v4092_v19 }
 0x22b   :  { %v133_v21 = vsel %vm107_vm0, %v132_v20, 0.0 }
 0x22c   :  { %134 = vadd.xlane.f32.xlu1 %v133_v21  ;;  %v3507_v21 = vld [vmem:[#allocation5] sm:$0xff]  }
 0x2b9   :  { %v135_v53 = vpop.xlane.xlu1 %134 }
 0x2ba   :  { %v136_v54 = vmul.f32 0.0078125, %v135_v53 }
 0x2bc   :  { %v137_v55 = vadd.f32 1e-05, %v136_v54 }
 0x2be   :  { %3757 = vrsqrt.f32 %v137_v55 }
 0x2c8   :  { %v3758_v63 = vpop.eup %3757 }
 0x2c9   :  { %v139_v1 = vmul.f32 %v3758_v63, %v4092_v19  ;;  %v486_v63 = vrot.slane %v4120_v58, 7 }
 0x2cb   :  { %v140_v3 = vmul.f32 %v139_v1, %v4115_v57  ;;  %v475_v1 = vrot.slane %v4120_v58, 6 }
 0x2cd   :  { %v4137_v4 = vadd.f32 %v4131_v0, %v140_v3 }
 0x2cf   :  { %v183_v6 = vsub.f32 %v4137_v4, %v181_v2 }
 0x2d1   :  { %v188_v7 = vrot.slane %v183_v6, %v4139_v5 }
 0x2d3   :  { %v190_v8 = vmul.f32 %v188_v7, %v4115_v57 }
 0x2d5   :  { %v192_v9 = vrot.slane %v190_v8, 5  ;;  %v195_v10 = vrot.slane %v190_v8, 3  ;;  %v198_v11 = vrot.slane %v190_v8, 4 }
 0x2d7   :  { %v194_v12 = vadd.f32 %v192_v9, %v4120_v58  ;;  %v200_v13 = vadd.f32 %v198_v11, %v4120_v58  ;;  %v197_v14 = vadd.f32 %v195_v10, %v4120_v58 }
 0x2d9   :  { %v202_v16 = vrot.slane %v194_v12, 1  ;;  %v205_v17 = vrot.slane %v200_v13, 7 }
 0x2db   :  { %v207_v18 = vsel %vm107_vm0, %v202_v16, %v197_v14 }
 0x2dc   :  { %v209_v19 = vsel %vm208_vm2, %v207_v18, %v205_v17 }
 0x2dd   :  { %v210_v20 = vpack.c.bf16 %v209_v19, %v209_v19 }
 0x2df   :  { %404 = vmatmul.mubr.bf16.vlgmr.msra.gmra.mrb[0].mxu0 %v210_v20  ;;  %3354 = vmatmul.mubr.bf16.vlgmr.msra.gmra.mrb[0].mxu1 %v210_v20 }
 0x2e0   :  { %3373 = vmatprep.mubr.msk.bf16.mxu0 %vm3958_vm1, %v3956_v25  ;;  %961 = vmatprep.mubr.bf16.mxu1 %v3957_v42 }
 0x2e1   :  { %3358 = vmatpush3.bf16.msra.mxu0 %v3507_v21 }
 0x2e2   :  { %3359 = vmatprep.subr.bf16.mxu0 %v3956_v25 }
 0x2e5   :  { %3360 = vmatpush3.bf16.msra.mxu0 %v3508_v22 }
 0x2e6   :  { %3361 = vmatprep.subr.bf16.mxu0 %v3956_v25 }
 0x2e9   :  { %3362 = vmatpush3.bf16.msra.mxu0 %v3509_v23 }
 0x2ea   :  { %3363 = vmatprep.subr.bf16.mxu0 %v3956_v25 }
 0x2ed   :  { %3364 = vmatpush3.bf16.msra.mxu0 %v3510_v24 }
 0x2ee   :  { %3365 = vmatprep.subr.bf16.mxu0 %v3956_v25 }
 0x2f1   :  { %3366 = vmatpush3.bf16.msra.mxu0 %v3511_v26 }
 0x2f2   :  { %3367 = vmatprep.subr.bf16.mxu0 %v3956_v25 }
 0x2f5   :  { %3368 = vmatpush3.bf16.msra.mxu0 %v3512_v27 }
 0x2f6   :  { %3369 = vmatprep.subr.bf16.mxu0 %v3956_v25 }
 0x2f9   :  { %3370 = vmatpush3.bf16.msra.mxu0 %v3513_v28 }
 0x2fa   :  { %3371 = vmatprep.subr.bf16.mxu0 %v3956_v25 }
 0x2fd   :  { %3372 = vmatpush3.bf16.msra.mxu0 %v3514_v29 }
 0x3b2   :  { %v405_v32 = vpop.f32.mrb[0].mxu0  ;;  %v446_v33 = vpop.f32.mrb[0].mxu1 }
 0x3b3   :  { %v407_v35 = vpop.f32.mrb[1].mxu0  ;;  %v3355_v36 = vpop.f32.mrb[1].mxu1  ;;  %v2987_v62 = vmul.f32 -1.442695, %v405_v32  ;;  %v512_v3 = vrot.slane %v446_v33, 1  ;;  %v479_v14 = vrot.slane %v446_v33, 3 }
 0x3b4   :  { %v459_v37 = vrot.slane %v407_v35, 2  ;;  %v499_v38 = vrot.slane %v407_v35, 5  ;;  %v409_v39 = vpop.f32.mrb[2].mxu0  ;;  %v449_v40 = vpop.f32.mrb[2].mxu1 }
 0x3b5   :  { %v410_v41 = vpop.f32.mrb[3].mxu0  ;;  %v3356_v43 = vpop.f32.mrb[3].mxu1 }
 0x3b6   :  { %v461_v44 = vadd.f32 %v459_v37, %v4115_v57  ;;  %v4167_v45 = vmax.f32 %v498_v34, %v499_v38 }
 0x3b8   :  { %v463_v46 = vrot.slane %v461_v44, 3  ;;  %v502_v47 = vsub.f32 %v498_v34, %v4167_v45  ;;  %v506_v48 = vrot.slane %v4167_v45, 3 }
 0x3ba   :  { %v465_v49 = vmax.f32 %v4120_v58, %v463_v46  ;;  %v503_v51 = vmul.f32 1.442695, %v502_v47  ;;  %v508_v52 = vsub.f32 %v407_v35, %v506_v48  ;;  %v3515_v48 = vld [vmem:[#allocation7] ss:$20 sps:$4 sm:$0xff]  }
 0x3bc   :  { %v466_v53 = vsub.f32 %v4120_v58, %v465_v49  ;;  %v470_v54 = vrot.slane %v465_v49, 5  ;;  %3759 = vpow2.f32 %v503_v51  ;;  %v509_v55 = vmul.f32 1.442695, %v508_v52  ;;  %v3520_v49 = vld [vmem:[#allocation7 + $0xc] ss:$20 sps:$4 sm:$0xff]  }
 0x3bd   :  { %v3518_v51 = vld [vmem:[#allocation7 + $0x8] ss:$20 sps:$4 sm:$0xff]   ;;  %970 = vmatprep.subr.bf16.mxu0 %v3520_v49  ;;  %v3523_v52 = vld [vmem:[#allocation7 + $0x2c] ss:$20 sps:$4 sm:$0xff]  }
 0x3be   :  { %v467_v60 = vmul.f32 1.442695, %v466_v53  ;;  %v472_v61 = vsub.f32 %v461_v44, %v470_v54  ;;  %3761 = vpow2.f32 %v509_v55  ;;  %v3521_v53 = vld [vmem:[#allocation7 + $0x28] ss:$20 sps:$4 sm:$0xff]   ;;  %v3524_v55 = vld [vmem:[#allocation7 + $0x30] ss:$20 sps:$4 sm:$0xff]  }
 0x3bf   :  { %v3526_v54 = vld [vmem:[#allocation7 + $0x34] ss:$20 sps:$4 sm:$0xff]  }
 0x3c0   :  { %v473_v57 = vmul.f32 1.442695, %v472_v61  ;;  %3763 = vpow2.f32 %v467_v60  ;;  %v3529_v60 = vld [vmem:[#allocation7 + $0x54] ss:$20 sps:$4 sm:$0xff]   ;;  %v3527_v61 = vld [vmem:[#allocation7 + $0x50] ss:$20 sps:$4 sm:$0xff]  }
 0x3c2   :  { %3765 = vpow2.f32 %v473_v57  ;;  %v3532_v57 = vld [vmem:[#allocation7 + $0x5c] ss:$20 sps:$4 sm:$0xff]  }
 0x3c3   :  { %3767 = vpow2.f32 %v2987_v62  ;;  %v3530_v62 = vld [vmem:[#allocation7 + $0x58] ss:$20 sps:$4 sm:$0xff]  }
 0x3c6   :  { %v3760_v2 = vpop.eup %3759 }
 0x3c7   :  { %v519_v6 = vmul.f32 %v3760_v2, %v486_v63  ;;  %v511_v7 = vmul.f32 %v3760_v2, %v475_v1  ;;  %v3538_v2 = vld [vmem:[#allocation7 + $0x84] ss:$20 sps:$4 sm:$0xff]  }
 0x3c8   :  { %v3762_v8 = vpop.eup %3761 }
 0x3c9   :  { %v514_v9 = vmul.f32 %v3762_v8, %v512_v3  ;;  %v521_v10 = vrot.slane %v3762_v8, 5  ;;  %v3536_v3 = vld [vmem:[#allocation7 + $0x80] ss:$20 sps:$4 sm:$0xff]  }
 0x3ca   :  { %v3764_v11 = vpop.eup %3763  ;;  %v3544_v8 = vld [vmem:[#allocation7 + $0xac] ss:$20 sps:$4 sm:$0xff]  }
 0x3cb   :  { %v516_v12 = vrot.slane %v514_v9, 5  ;;  %v4175_v13 = vadd.f32 %v521_v10, %v519_v6  ;;  %v488_v18 = vmul.f32 %v3764_v11, %v486_v63  ;;  %v477_v23 = vmul.f32 %v3764_v11, %v475_v1  ;;  %v3535_v63 = vld [vmem:[#allocation7 + $0x7c] ss:$20 sps:$4 sm:$0xff]   ;;  %v3533_v1 = vld [vmem:[#allocation7 + $0x78] ss:$20 sps:$4 sm:$0xff]  }
 0x3cc   :  { %v3766_v16 = vpop.eup %3765  ;;  %v3541_v6 = vld [vmem:[#allocation7 + $0xa4] ss:$20 sps:$4 sm:$0xff]   ;;  %v3542_v9 = vld [vmem:[#allocation7 + $0xa8] ss:$20 sps:$4 sm:$0xff]   ;;  %v3547_v10 = vld [vmem:[#allocation7 + $0xcc] ss:$20 sps:$4 sm:$0xff]  }
 0x3cd   :  { %v4177_v17 = vadd.f32 %v516_v12, %v511_v7  ;;  %v490_v19 = vrot.slane %v3766_v16, 3  ;;  %v481_v20 = vmul.f32 %v3766_v16, %v479_v14  ;;  %v3768_v21 = vpop.eup %3767  ;;  %v3539_v7 = vld [vmem:[#allocation7 + $0xa0] ss:$20 sps:$4 sm:$0xff]   ;;  %v3545_v11 = vld [vmem:[#allocation7 + $0xc8] ss:$20 sps:$4 sm:$0xff]  }
 0x3ce   :  { %v455_v26 = vadd.f32 1.0, %v3768_v21  ;;  %v3550_v12 = vld [vmem:[#allocation7 + $0xd4] ss:$20 sps:$4 sm:$0xff]   ;;  %v3548_v14 = vld [vmem:[#allocation7 + $0xd0] ss:$20 sps:$4 sm:$0xff]  }
 0x3cf   :  { %v492_v22 = vadd.f32 %v490_v19, %v488_v18  ;;  %v483_v24 = vrot.slane %v481_v20, 3  ;;  %v3551_v16 = vld [vmem:[#allocation7 + $0xf0] ss:$20 sps:$4 sm:$0xff]   ;;  %v3553_v18 = vld [vmem:[#allocation7 + $0xf4] ss:$20 sps:$4 sm:$0xff]  }
 0x3d0   :  { %v3554_v19 = vld [vmem:[#allocation7 + $0xf8] ss:$20 sps:$4 sm:$0xff]   ;;  %v3556_v20 = vld [vmem:[#allocation7 + $0xfc] ss:$20 sps:$4 sm:$0xff]  }
 0x3d1   :  { %v485_v27 = vadd.f32 %v483_v24, %v477_v23  ;;  %3769 = vrcp.f32 %v492_v22  ;;  %v3559_v21 = vld [vmem:[#allocation7 + $0x11c] ss:$20 sps:$4 sm:$0xff]   ;;  %v3562_v22 = vld [vmem:[#allocation7 + $0x124] ss:$20 sps:$4 sm:$0xff]   ;;  %v3560_v24 = vld [vmem:[#allocation7 + $0x120] ss:$20 sps:$4 sm:$0xff]  }
 0x3d2   :  { %3771 = vrcp.f32 %v455_v26  ;;  %v3557_v23 = vld [vmem:[#allocation7 + $0x118] ss:$20 sps:$4 sm:$0xff]   ;;  %v3571_v26 = vld [vmem:[#allocation8 + $0x40] sm:$0xff]  }
 0x3db   :  { %v3770_v28 = vpop.eup %3769 }
 0x3dc   :  { %v494_v29 = vmul.f32 %v3770_v28, %v485_v27  ;;  %v3772_v32 = vpop.eup %3771 }
 0x3de   :  { %v525_v31 = vrot.slane %v494_v29, 4 }
 0x3e0   :  { %v527_v34 = vmul.f32 %v3772_v32, %v525_v31  ;;  %v156_v31 = vrot.slane %v4124_v59, %v4110_v56 }
 0x3e2   :  { %v528_v33 = vpack.c.bf16 %v527_v34, %v527_v34  ;;  %v647_v32 = vcombine.high %v156_v31, %v156_v31  ;;  %v3598_v31 = vld [vmem:[#allocation8 + $0xa8] sm:$0xff]  }
 0x3e4   :  { %3374 = vmatmul.mubr.bf16.vlgmr.msra.gmra.mrb[4].mxu0 %v528_v33  ;;  %v650_v33 = vcombine.high %v4131_v0, %v4131_v0 }
 0x3e5   :  { %1002 = vmatprep.mubr.bf16.mxu0 %v3957_v42  ;;  %971 = vmatpush1.bf16.msra.mxu0 %v3518_v51 }
 0x3e6   :  { %972 = vmatprep.subr.bf16.mxu0 %v3526_v54  ;;  %v3572_v54 = vld [vmem:[#allocation8] sm:$0xff]  }
 0x3e9   :  { %973 = vmatpush1.bf16.msra.mxu0 %v3524_v55  ;;  %v3573_v55 = vld [vmem:[#allocation8 + $0x48] sm:$0xff]  }
 0x3ea   :  { %974 = vmatprep.subr.bf16.mxu0 %v3532_v57  ;;  %v3577_v57 = vld [vmem:[#allocation8 + $0x58] sm:$0xff]  }
 0x3ed   :  { %975 = vmatpush1.bf16.msra.mxu0 %v3530_v62  ;;  %v3566_v62 = vld [vmem:[#allocation7 + $0x88] ss:$20 sps:$4 sm:$0xff]  }
 0x3ee   :  { %976 = vmatprep.subr.bf16.mxu0 %v3538_v2  ;;  %v3567_v2 = vld [vmem:[#allocation7 + $0xb0] ss:$20 sps:$4 sm:$0xff]  }
 0x3f1   :  { %977 = vmatpush1.bf16.msra.mxu0 %v3536_v3  ;;  %v3580_v3 = vld [vmem:[#allocation8 + $0x20] sm:$0xff]  }
 0x3f2   :  { %978 = vmatprep.subr.bf16.mxu0 %v3544_v8  ;;  %v3582_v8 = vld [vmem:[#allocation8 + $0x28] sm:$0xff]  }
 0x3f5   :  { %979 = vmatpush1.bf16.msra.mxu0 %v3542_v9  ;;  %v3569_v9 = vld [vmem:[#allocation7 + $0x100] ss:$20 sps:$4 sm:$0xff]  }
 0x3f6   :  { %980 = vmatprep.subr.bf16.mxu0 %v3550_v12  ;;  %v3584_v12 = vld [vmem:[#allocation8 + $0x30] sm:$0xff]  }
 0x3f9   :  { %981 = vmatpush1.bf16.msra.mxu0 %v3548_v14  ;;  %v3585_v14 = vld [vmem:[#allocation8 + $0x78] sm:$0xff]  }
 0x3fa   :  { %982 = vmatprep.subr.bf16.mxu0 %v3556_v20  ;;  %v3589_v20 = vld [vmem:[#allocation8 + $0xc8] sm:$0xff]  }
 0x3fd   :  { %983 = vmatpush1.bf16.msra.mxu0 %v3554_v19  ;;  %v3588_v19 = vld [vmem:[#allocation8 + $0x80] sm:$0xff]  }
 0x3fe   :  { %984 = vmatprep.subr.bf16.mxu0 %v3562_v22  ;;  %v3591_v22 = vld [vmem:[#allocation8 + $0xd0] sm:$0xff]  }
 0x401   :  { %985 = vmatpush1.bf16.msra.mxu0 %v3560_v24  ;;  %v3593_v24 = vld [vmem:[#allocation8 + $0xd8] sm:$0xff]  }
 0x402   :  { %3222 = vmatprep.subr.bf16.mxu0 %v3571_v26  ;;  %v3594_v26 = vld [vmem:[#allocation8 + $0x98] sm:$0xff]  }
 0x4b7   :  { %v627_v35 = vpop.f32.mrb[4].mxu0 }
 0x4b8   :  { %v4181_v36 = vadd.f32 %v627_v35, %v4087_v15  ;;  %v3375_v37 = vpop.f32.mrb[5].mxu0  ;;  %v3517_v15 = vld [vmem:[#allocation7 + $0x4] ss:$20 sps:$4 sm:$0xff]  }
 0x4b9   :  { %v630_v38 = vpop.f32.mrb[6].mxu0  ;;  %929 = vmatprep.subr.bf16.mxu1 %v3517_v15 }
 0x4ba   :  { %v3376_v39 = vpop.f32.mrb[7].mxu0  ;;  %v634_v40 = vsel %vm107_vm0, %v4181_v36, 0.0  ;;  %930 = vmatpush1.bf16.msra.mxu1 %v3515_v48  ;;  %v1427_v38 = vrot.slane %v4137_v4, %v4139_v5 }
 0x4bb   :  { %635 = vadd.xlane.f32.xlu0 %v634_v40  ;;  %931 = vmatprep.subr.bf16.mxu1 %v3523_v52  ;;  %v1430_v40 = vrot.slane %v4177_v17, 2  ;;  %v3563_v52 = vld [vmem:[#allocation7 + $0x10] ss:$20 sps:$4 sm:$0xff]  }
 0x4be   :  { %932 = vmatpush1.bf16.msra.mxu1 %v3521_v53 }
 0x4bf   :  { %933 = vmatprep.subr.bf16.mxu1 %v3529_v60  ;;  %v3565_v60 = vld [vmem:[#allocation7 + $0x60] ss:$20 sps:$4 sm:$0xff]  }
 0x4c2   :  { %934 = vmatpush1.bf16.msra.mxu1 %v3527_v61  ;;  %v3576_v61 = vld [vmem:[#allocation8 + $0x10] sm:$0xff]  }
 0x4c3   :  { %935 = vmatprep.subr.bf16.mxu1 %v3535_v63  ;;  %v3578_v63 = vld [vmem:[#allocation8 + $0x18] sm:$0xff]  }
 0x4c6   :  { %936 = vmatpush1.bf16.msra.mxu1 %v3533_v1  ;;  %v3579_v1 = vld [vmem:[#allocation8 + $0x60] sm:$0xff]  }
 0x4c7   :  { %937 = vmatprep.subr.bf16.mxu1 %v3541_v6  ;;  %v3581_v6 = vld [vmem:[#allocation8 + $0x68] sm:$0xff]  }
 0x4ca   :  { %938 = vmatpush1.bf16.msra.mxu1 %v3539_v7  ;;  %v3568_v7 = vld [vmem:[#allocation7 + $0xd8] ss:$20 sps:$4 sm:$0xff]  }
 0x4cb   :  { %939 = vmatprep.subr.bf16.mxu1 %v3547_v10  ;;  %v3570_v10 = vld [vmem:[#allocation7 + $0x128] ss:$20 sps:$4 sm:$0xff]  }
 0x4ce   :  { %940 = vmatpush1.bf16.msra.mxu1 %v3545_v11  ;;  %v3583_v11 = vld [vmem:[#allocation8 + $0x70] sm:$0xff]  }
 0x4cf   :  { %941 = vmatprep.subr.bf16.mxu1 %v3553_v18  ;;  %v3587_v18 = vld [vmem:[#allocation8 + $0xc0] sm:$0xff]  }
 0x4d2   :  { %942 = vmatpush1.bf16.msra.mxu1 %v3551_v16  ;;  %v3586_v16 = vld [vmem:[#allocation8 + $0x38] sm:$0xff]  }
 0x4d3   :  { %943 = vmatprep.subr.bf16.mxu1 %v3559_v21  ;;  %v3590_v21 = vld [vmem:[#allocation8 + $0x88] sm:$0xff]  }
 0x4d6   :  { %944 = vmatpush1.bf16.msra.mxu1 %v3557_v23  ;;  %v3592_v23 = vld [vmem:[#allocation8 + $0x90] sm:$0xff]  }
 0x4d7   :  { %3377 = vmatprep.subr.bf16.mxu1 %v3956_v25 }
 0x548   :  { %v636_v41 = vpop.xlane.xlu0 %635 }
 0x549   :  { %v637_v43 = vmul.f32 0.0078125, %v636_v41  ;;  %v1433_v41 = vrot.slane %v4175_v13, 1 }
 0x54b   :  { %v4186_v44 = vsub.f32 %v4181_v36, %v637_v43 }
 0x54d   :  { %v639_v46 = vmul.f32 %v4186_v44, %v4186_v44 }
 0x54f   :  { %v640_v47 = vsel %vm107_vm0, %v639_v46, 0.0 }
 0x550   :  { %641 = vadd.xlane.f32.xlu1 %v640_v47 }
 0x5dd   :  { %v642_v27 = vpop.xlane.xlu1 %641 }
 0x5de   :  { %v643_v28 = vmul.f32 0.0078125, %v642_v27  ;;  %v3595_v27 = vld [vmem:[#allocation8 + $0xe0] sm:$0xff]  }
 0x5e0   :  { %v644_v29 = vadd.f32 1e-05, %v643_v28  ;;  %v3596_v28 = vld [vmem:[#allocation8 + $0xa0] sm:$0xff]  }
 0x5e2   :  { %3773 = vrsqrt.f32 %v644_v29  ;;  %v3597_v29 = vld [vmem:[#allocation8 + $0xe8] sm:$0xff]  }
 0x5ec   :  { %v3774_v34 = vpop.eup %3773 }
 0x5ed   :  { %v646_v35 = vmul.f32 %v3774_v34, %v4186_v44  ;;  %v3600_v34 = vld [vmem:[#allocation8 + $0xb0] sm:$0xff]  }
 0x5ef   :  { %v649_v37 = vmul.f32 %v647_v32, %v646_v35  ;;  %v3599_v32 = vld [vmem:[#allocation8 + $0xf0] sm:$0xff]   ;;  %v3602_v35 = vld [vmem:[#allocation8 + $0xb8] sm:$0xff]  }
 0x5f1   :  { %v652_v39 = vadd.f32 %v650_v33, %v649_v37  ;;  %v3601_v33 = vld [vmem:[#allocation8 + $0xf8] sm:$0xff]  }
 0x5f3   :  { %v653_v59 = vsub.f32 %v652_v39, %v4120_v58  ;;  %v1435_v43 = vsel %vm107_vm0, %v652_v39, %v1427_v38 }
 0x5f4   :  { %v1436_v46 = vsel %vm208_vm2, %v1435_v43, %v1430_v40 }
 0x5f5   :  { %v1438_v0 = vsel %vm1437_vm3, %v1436_v46, %v1433_v41  ;;  %v658_v44 = vrot.slane %v653_v59, %v4139_v5 }
 0x5f6   :  { %v1440_v4 = vsel %vm1439_vm4, %v1438_v0, %v4167_v45  ;;  %v3564_v45 = vld [vmem:[#allocation7 + $0x38] ss:$20 sps:$4 sm:$0xff]  }
 0x5f7   :  { %1441 = vst [vmem:[%s4392_s10] sm:$0x1f] %v1440_v4  ;;  %v660_v13 = vmul.f32 %v658_v44, %v4162_v30  ;;  %v3574_v30 = vld [vmem:[#allocation8 + $0x8] sm:$0xff]  }
 0x5f9   :  { %v662_v17 = vrot.slane %v660_v13, 2  ;;  %v665_v47 = vrot.slane %v660_v13, 1 }
 0x5fb   :  { %v667_v15 = vadd.f32 %v665_v47, %v4120_v58  ;;  %v664_v48 = vadd.f32 %v662_v17, %v4120_v58  ;;  %v3575_v58 = vld [vmem:[#allocation8 + $0x50] sm:$0xff]  }
 0x5fd   :  { %v669_v49 = vrot.slane %v667_v15, 7 }
 0x5ff   :  { %v671_v51 = vsel %vm107_vm0, %v664_v48, %v669_v49 }
 0x600   :  { %v672_v53 = vpack.c.bf16 %v671_v51, %v671_v51 }
 0x602   :  { %962 = vmatmul.mubr.bf16.vlgmr.msra.gmra.mrb[4].mxu1 %v672_v53  ;;  %1003 = vmatmul.mubr.bf16.vlgmr.msra.gmra.mrb[8].mxu0 %v672_v53 }
 0x603   :  { %3378 = vmatpush3.bf16.msra.mxu1 %v3563_v52  ;;  %3393 = vmatprep.mubr.msk.bf16.mxu1 %vm3958_vm1, %v3956_v25 }
 0x604   :  { %3379 = vmatprep.subr.bf16.mxu1 %v3956_v25  ;;  %3223 = vmatpush3.bf16.msra.mxu0 %v3572_v54 }
 0x605   :  { %3224 = vmatprep.subr.bf16.mxu0 %v3573_v55 }
 0x607   :  { %3380 = vmatpush3.bf16.msra.mxu1 %v3564_v45 }
 0x608   :  { %3381 = vmatprep.subr.bf16.mxu1 %v3956_v25  ;;  %3225 = vmatpush3.bf16.msra.mxu0 %v3574_v30 }
 0x609   :  { %3226 = vmatprep.subr.bf16.mxu0 %v3575_v58 }
 0x60b   :  { %3382 = vmatpush3.bf16.msra.mxu1 %v3565_v60 }
 0x60c   :  { %3383 = vmatprep.subr.bf16.mxu1 %v3956_v25  ;;  %3227 = vmatpush3.bf16.msra.mxu0 %v3576_v61 }
 0x60d   :  { %3228 = vmatprep.subr.bf16.mxu0 %v3577_v57 }
 0x60f   :  { %3384 = vmatpush3.bf16.msra.mxu1 %v3566_v62 }
 0x610   :  { %3385 = vmatprep.subr.bf16.mxu1 %v3956_v25  ;;  %3229 = vmatpush3.bf16.msra.mxu0 %v3578_v63 }
 0x611   :  { %3230 = vmatprep.subr.bf16.mxu0 %v3579_v1 }
 0x613   :  { %3386 = vmatpush3.bf16.msra.mxu1 %v3567_v2 }
 0x614   :  { %3387 = vmatprep.subr.bf16.mxu1 %v3956_v25  ;;  %3231 = vmatpush3.bf16.msra.mxu0 %v3580_v3 }
 0x615   :  { %3232 = vmatprep.subr.bf16.mxu0 %v3581_v6 }
 0x617   :  { %3388 = vmatpush3.bf16.msra.mxu1 %v3568_v7 }
 0x618   :  { %3389 = vmatprep.subr.bf16.mxu1 %v3956_v25  ;;  %3233 = vmatpush3.bf16.msra.mxu0 %v3582_v8 }
 0x619   :  { %3234 = vmatprep.subr.bf16.mxu0 %v3583_v11 }
 0x61b   :  { %3390 = vmatpush3.bf16.msra.mxu1 %v3569_v9 }
 0x61c   :  { %3391 = vmatprep.subr.bf16.mxu1 %v3956_v25  ;;  %3235 = vmatpush3.bf16.msra.mxu0 %v3584_v12 }
 0x61d   :  { %3236 = vmatprep.subr.bf16.mxu0 %v3585_v14 }
 0x61f   :  { %3392 = vmatpush3.bf16.msra.mxu1 %v3570_v10 }
 0x620   :  { %3237 = vmatpush3.bf16.msra.mxu0 %v3586_v16  ;;  %3244 = vmatprep.subr.bf16.mxu1 %v3587_v18 }
 0x622   :  { %3394 = vmatmul.mubr.bf16.vlgmr.msra.gmra.mrb[8].mxu1 %v672_v53 }
 0x623   :  { %3245 = vmatpush3.bf16.msra.mxu1 %v3588_v19 }
 0x624   :  { %3246 = vmatprep.subr.bf16.mxu1 %v3589_v20 }
 0x627   :  { %3247 = vmatpush3.bf16.msra.mxu1 %v3590_v21 }
 0x628   :  { %3248 = vmatprep.subr.bf16.mxu1 %v3591_v22 }
 0x62b   :  { %3249 = vmatpush3.bf16.msra.mxu1 %v3592_v23 }
 0x62c   :  { %3250 = vmatprep.subr.bf16.mxu1 %v3593_v24 }
 0x62f   :  { %3251 = vmatpush3.bf16.msra.mxu1 %v3594_v26 }
 0x630   :  { %3252 = vmatprep.subr.bf16.mxu1 %v3595_v27 }
 0x633   :  { %3253 = vmatpush3.bf16.msra.mxu1 %v3596_v28  ;;  %v3605_v28 = vld [vmem:[#allocation2 + $0xc4] ss:$12 sps:$4 sm:$0xff]  }
 0x634   :  { %3254 = vmatprep.subr.bf16.mxu1 %v3597_v29  ;;  %v3603_v29 = vld [vmem:[#allocation2 + $0xc0] ss:$12 sps:$4 sm:$0xff]   ;;  %1691 = vmatprep.subr.bf16.mxu0 %v3605_v28 }
 0x635   :  { %v3640_v28 = vld [vmem:[#allocation5 + $0x68] sm:$0xff]  }
 0x637   :  { %3255 = vmatpush3.bf16.msra.mxu1 %v3598_v31  ;;  %v3606_v31 = vld [vmem:[#allocation2 + $0xc8] ss:$12 sps:$4 sm:$0xff]  }
 0x638   :  { %3256 = vmatprep.subr.bf16.mxu1 %v3599_v32  ;;  %v3607_v32 = vld [vmem:[#allocation2 + $0xd8] ss:$12 sps:$4 sm:$0xff]  }
 0x63b   :  { %3257 = vmatpush3.bf16.msra.mxu1 %v3600_v34  ;;  %v3610_v34 = vld [vmem:[#allocation2 + $0xe0] ss:$12 sps:$4 sm:$0xff]  }
 0x63c   :  { %3258 = vmatprep.subr.bf16.mxu1 %v3601_v33  ;;  %v3613_v33 = vld [vmem:[#allocation2 + $0xf4] ss:$12 sps:$4 sm:$0xff]  }
 0x63f   :  { %3259 = vmatpush3.bf16.msra.mxu1 %v3602_v35  ;;  %v3611_v35 = vld [vmem:[#allocation2 + $0xf0] ss:$12 sps:$4 sm:$0xff]  }
 0x640   :  { %3397 = vmatprep.subr.bf16.mxu1 %v3956_v25 }
 0x6d5   :  { %v963_v37 = vpop.f32.mrb[4].mxu1  ;;  %v1004_v38 = vpop.f32.mrb[8].mxu0 }
 0x6d6   :  { %v1058_v39 = vmax.f32 %v1004_v38, 0.0  ;;  %v965_v40 = vpop.f32.mrb[5].mxu1  ;;  %v1006_v41 = vpop.f32.mrb[9].mxu0  ;;  %v3036_v6 = vmul.f32 -1.442695, %v963_v37 }
 0x6d7   :  { %v1057_v59 = vmax.f32 %v965_v40, 0.0  ;;  %v967_v43 = vpop.f32.mrb[6].mxu1  ;;  %v1008_v46 = vpop.f32.mrb[10].mxu0  ;;  %v1059_v49 = vmax.f32 %v1006_v41, 0.0  ;;  %v3614_v37 = vld [vmem:[#allocation2 + $0xf8] ss:$12 sps:$4 sm:$0xff]  }
 0x6d8   :  { %v1062_v0 = vmul.f32 %v1058_v39, %v1058_v39  ;;  %v968_v44 = vpop.f32.mrb[7].mxu1  ;;  %v1009_v4 = vpop.f32.mrb[11].mxu0  ;;  %3775 = vpow2.f32 %v3036_v6  ;;  %v3617_v38 = vld [vmem:[#allocation2 + $0x10c] ss:$12 sps:$4 sm:$0xff]   ;;  %v3615_v39 = vld [vmem:[#allocation2 + $0x108] ss:$12 sps:$4 sm:$0xff]  }
 0x6d9   :  { %v1061_v13 = vmul.f32 %v1057_v59, %v1057_v59  ;;  %v1063_v51 = vmul.f32 %v1059_v49, %v1059_v49  ;;  %v3618_v40 = vld [vmem:[#allocation2 + $0x110] ss:$12 sps:$4 sm:$0xff]   ;;  %v3619_v59 = vld [vmem:[#allocation2 + $0x120] ss:$12 sps:$4 sm:$0xff]   ;;  %v3622_v43 = vld [vmem:[#allocation2 + $0x128] ss:$12 sps:$4 sm:$0xff]  }
 0x6da   :  { %v1066_v17 = vpack.c.bf16 %v1062_v0, %v1062_v0  ;;  %v3621_v41 = vld [vmem:[#allocation2 + $0x124] ss:$12 sps:$4 sm:$0xff]   ;;  %v3625_v0 = vld [vmem:[#allocation2 + $0x13c] ss:$12 sps:$4 sm:$0xff]   ;;  %v3626_v44 = vld [vmem:[#allocation2 + $0x140] ss:$12 sps:$4 sm:$0xff]  }
 0x6db   :  { %v1065_v47 = vpack.c.bf16 %v1061_v13, %v1061_v13  ;;  %v1067_v58 = vpack.c.bf16 %v1063_v51, %v1063_v51  ;;  %v3623_v46 = vld [vmem:[#allocation2 + $0x138] ss:$12 sps:$4 sm:$0xff]   ;;  %v3629_v4 = vld [vmem:[#allocation2 + $0x154] ss:$12 sps:$4 sm:$0xff]   ;;  %v3627_v13 = vld [vmem:[#allocation2 + $0x150] ss:$12 sps:$4 sm:$0xff]  }
 0x6dc   :  { %v1137_v15 = vshrl.u32 %v1066_v17, 16  ;;  %v3630_v17 = vld [vmem:[#allocation2 + $0x158] ss:$12 sps:$4 sm:$0xff]  }
 0x6dd   :  { %v1134_v48 = vshrl.u32 %v1065_v47, 16  ;;  %v1140_v57 = vshrl.u32 %v1067_v58, 16  ;;  %v3633_v47 = vld [vmem:[#allocation2 + $0x16c] ss:$12 sps:$4 sm:$0xff]  }
 0x6de   :  { %1373 = vmatprep.mubr.bf16.mxu0 %v1137_v15  ;;  %v3631_v15 = vld [vmem:[#allocation2 + $0x168] ss:$12 sps:$4 sm:$0xff]  }
 0x6df   :  { %1374 = vmatmul.mubr.bf16.vlgmr.msra.gmra.mrb[12].mxu0 %v1134_v48  ;;  %v3634_v48 = vld [vmem:[#allocation2 + $0x170] ss:$12 sps:$4 sm:$0xff]  }
 0x6e0   :  { %1723 = vmatprep.mubr.bf16.mxu0 %v3957_v42  ;;  %1692 = vmatpush1.bf16.msra.mxu0 %v3603_v29  ;;  %v3641_v29 = vld [vmem:[#allocation5 + $0x70] sm:$0xff]  }
 0x6e2   :  { %v3776_v7 = vpop.eup %3775 }
 0x6e3   :  { %v1054_v8 = vadd.f32 1.0, %v3776_v7 }
 0x6e5   :  { %3777 = vrcp.f32 %v1054_v8 }
 0x6ef   :  { %v3778_v18 = vpop.eup %3777 }
 0x6f5   :  { %v1045_v52 = vpop.f32.mrb[8].mxu1 }
 0x6f6   :  { %v1060_v53 = vmax.f32 %v1045_v52, 0.0  ;;  %v3395_v54 = vpop.f32.mrb[9].mxu1 }
 0x6f7   :  { %v1048_v55 = vpop.f32.mrb[10].mxu1  ;;  %v4255_v54 = vld [vmem:[%s4385_s3 + $0x8] sm:$0x1f] }
 0x6f8   :  { %v1064_v45 = vmul.f32 %v1060_v53, %v1060_v53  ;;  %v3396_v30 = vpop.f32.mrb[11].mxu1  ;;  %v4250_v53 = vld [vmem:[%s4384_s2 + $0x10] sm:$0xff] }
 0x6f9   :  { %v4259_v55 = vrot.slane %v4250_v53, %v4110_v56 }
 0x6fa   :  { %v1068_v60 = vpack.c.bf16 %v1064_v45, %v1064_v45  ;;  %v1493_v45 = vrot.slane %v4255_v54, %v4110_v56 }
 0x6fb   :  { %v1469_v30 = vcombine.high %v4259_v55, %v4259_v55 }
 0x6fc   :  { %v1143_v61 = vshrl.u32 %v1068_v60, 16  ;;  %v1494_v58 = vcombine.high %v1493_v45, %v1493_v45 }
 0x6fe   :  { %1413 = vmatprep.mubr.bf16.mxu1 %v1143_v61  ;;  %v4266_v61 = vrot.slane %v1469_v30, %v4110_v56 }
 0x6ff   :  { %1414 = vmatmul.mubr.bf16.vlgmr.msra.gmra.mrb[12].mxu1 %v1140_v57 }
 0x700   :  { %3413 = vmatprep.mubr.msk.bf16.mxu1 %vm3958_vm1, %v3956_v25  ;;  %3398 = vmatpush3.bf16.msra.mxu1 %v3606_v31  ;;  %v3642_v31 = vld [vmem:[#allocation5 + $0x78] sm:$0xff]  }
 0x701   :  { %3399 = vmatprep.subr.bf16.mxu1 %v3956_v25 }
 0x704   :  { %3400 = vmatpush3.bf16.msra.mxu1 %v3610_v34 }
 0x705   :  { %3401 = vmatprep.subr.bf16.mxu1 %v3956_v25 }
 0x708   :  { %3402 = vmatpush3.bf16.msra.mxu1 %v3614_v37 }
 0x709   :  { %3403 = vmatprep.subr.bf16.mxu1 %v3956_v25 }
 0x70c   :  { %3404 = vmatpush3.bf16.msra.mxu1 %v3618_v40 }
 0x70d   :  { %3405 = vmatprep.subr.bf16.mxu1 %v3956_v25 }
 0x710   :  { %3406 = vmatpush3.bf16.msra.mxu1 %v3622_v43 }
 0x711   :  { %3407 = vmatprep.subr.bf16.mxu1 %v3956_v25 }
 0x714   :  { %3408 = vmatpush3.bf16.msra.mxu1 %v3626_v44 }
 0x715   :  { %3409 = vmatprep.subr.bf16.mxu1 %v3956_v25 }
 0x718   :  { %3410 = vmatpush3.bf16.msra.mxu1 %v3630_v17 }
 0x719   :  { %3411 = vmatprep.subr.bf16.mxu1 %v3956_v25 }
 0x71c   :  { %3412 = vmatpush3.bf16.msra.mxu1 %v3634_v48 }
 0x7b2   :  { %v3238_v62 = vpop.f32.mrb[12].mxu0 }
 0x7b3   :  { %v3239_v63 = vpop.f32.mrb[13].mxu0 }
 0x7b4   :  { %v3240_v1 = vadd.f32 %v3239_v63, %v3238_v62  ;;  %v3241_v2 = vpop.f32.mrb[14].mxu0  ;;  %v1501_v62 = vrot.slane %v1494_v58, %v4110_v56 }
 0x7b5   :  { %v3242_v3 = vpop.f32.mrb[15].mxu0 }
 0x7d2   :  { %v3260_v9 = vpop.f32.mrb[12].mxu1 }
 0x7d3   :  { %v3261_v10 = vpop.f32.mrb[13].mxu1 }
 0x7d4   :  { %v3262_v11 = vadd.f32 %v3261_v10, %v3260_v9  ;;  %v3263_v12 = vpop.f32.mrb[14].mxu1 }
 0x7d5   :  { %v3264_v14 = vpop.f32.mrb[15].mxu1 }
 0x7d6   :  { %v1416_v16 = vadd.f32 %v3262_v11, %v3240_v1 }
 0x7d8   :  { %v1421_v19 = vmul.f32 %v3778_v18, %v1416_v16 }
 0x7da   :  { %v4229_v20 = vadd.f32 %v1421_v19, %v4181_v36  ;;  %v3609_v36 = vld [vmem:[#allocation2 + $0xdc] ss:$12 sps:$4 sm:$0xff]  }
 0x7db   :  { %1693 = vmatprep.subr.bf16.mxu0 %v3609_v36  ;;  %v4295_v36 = vld [vmem:[%s4384_s2 + $0x18] sm:$0x7] }
 0x7dc   :  { %v1447_v21 = vsel %vm107_vm0, %v4229_v20, 0.0  ;;  %1694 = vmatpush1.bf16.msra.mxu0 %v3607_v32  ;;  %v1816_v32 = vrot.slane %v4295_v36, 4 }
 0x7dd   :  { %1448 = vadd.xlane.f32.xlu0 %v1447_v21  ;;  %1695 = vmatprep.subr.bf16.mxu0 %v3613_v33 }
 0x7e0   :  { %1696 = vmatpush1.bf16.msra.mxu0 %v3611_v35  ;;  %v1818_v35 = vadd.f32 %v4255_v54, %v1816_v32 }
 0x7e1   :  { %1697 = vmatprep.subr.bf16.mxu0 %v3617_v38 }
 0x7e4   :  { %1698 = vmatpush1.bf16.msra.mxu0 %v3615_v39 }
 0x7e5   :  { %1699 = vmatprep.subr.bf16.mxu0 %v3621_v41 }
 0x7e8   :  { %1700 = vmatpush1.bf16.msra.mxu0 %v3619_v59 }
 0x7e9   :  { %1701 = vmatprep.subr.bf16.mxu0 %v3625_v0 }
 0x7ec   :  { %1702 = vmatpush1.bf16.msra.mxu0 %v3623_v46 }
 0x7ed   :  { %1703 = vmatprep.subr.bf16.mxu0 %v3629_v4 }
 0x7f0   :  { %1704 = vmatpush1.bf16.msra.mxu0 %v3627_v13 }
 0x7f1   :  { %1705 = vmatprep.subr.bf16.mxu0 %v3633_v47 }
 0x7f4   :  { %1706 = vmatpush1.bf16.msra.mxu0 %v3631_v15 }
 0x7f5   :  { %3417 = vmatprep.subr.bf16.mxu0 %v3956_v25 }
 0x86a   :  { %v1449_v22 = vpop.xlane.xlu0 %1448 }
 0x86b   :  { %v1450_v23 = vmul.f32 0.0078125, %v1449_v22  ;;  %v3635_v22 = vld [vmem:[#allocation5 + $0x40] sm:$0xff]  }
 0x86d   :  { %v4234_v24 = vsub.f32 %v4229_v20, %v1450_v23  ;;  %v3636_v23 = vld [vmem:[#allocation5 + $0x48] sm:$0xff]  }
 0x86f   :  { %v1452_v26 = vmul.f32 %v4234_v24, %v4234_v24 }
 0x871   :  { %v1453_v27 = vsel %vm107_vm0, %v1452_v26, 0.0  ;;  %v3638_v26 = vld [vmem:[#allocation5 + $0x58] sm:$0xff]  }
 0x872   :  { %1454 = vadd.xlane.f32.xlu1 %v1453_v27  ;;  %v3639_v27 = vld [vmem:[#allocation5 + $0x60] sm:$0xff]  }
 0x8ff   :  { %v1455_v49 = vpop.xlane.xlu1 %1454 }
 0x900   :  { %v1456_v51 = vmul.f32 0.0078125, %v1455_v49 }
 0x902   :  { %v1457_v52 = vadd.f32 1e-05, %v1456_v51 }
 0x904   :  { %3779 = vrsqrt.f32 %v1457_v52 }
 0x90e   :  { %v3780_v60 = vpop.eup %3779 }
 0x90f   :  { %v1459_v57 = vmul.f32 %v3780_v60, %v4234_v24  ;;  %v3637_v24 = vld [vmem:[#allocation5 + $0x50] sm:$0xff]   ;;  %v1806_v60 = vrot.slane %v4255_v54, 7 }
 0x911   :  { %v1460_v63 = vmul.f32 %v4250_v53, %v1459_v57  ;;  %v1795_v57 = vrot.slane %v4255_v54, 6 }
 0x913   :  { %v4272_v1 = vadd.f32 %v4266_v61, %v1460_v63 }
 0x915   :  { %v1503_v2 = vsub.f32 %v4272_v1, %v1501_v62 }
 0x917   :  { %v1508_v3 = vrot.slane %v1503_v2, %v4139_v5 }
 0x919   :  { %v1510_v6 = vmul.f32 %v4250_v53, %v1508_v3 }
 0x91b   :  { %v1512_v7 = vrot.slane %v1510_v6, 5  ;;  %v1515_v8 = vrot.slane %v1510_v6, 3  ;;  %v1518_v9 = vrot.slane %v1510_v6, 4 }
 0x91d   :  { %v1514_v10 = vadd.f32 %v4255_v54, %v1512_v7  ;;  %v1520_v11 = vadd.f32 %v4255_v54, %v1518_v9  ;;  %v1517_v12 = vadd.f32 %v4255_v54, %v1515_v8 }
 0x91f   :  { %v1522_v14 = vrot.slane %v1514_v10, 1  ;;  %v1525_v16 = vrot.slane %v1520_v11, 7 }
 0x921   :  { %v1527_v18 = vsel %vm107_vm0, %v1522_v14, %v1517_v12 }
 0x922   :  { %v1528_v19 = vsel %vm208_vm2, %v1527_v18, %v1525_v16 }
 0x923   :  { %v1529_v21 = vpack.c.bf16 %v1528_v19, %v1528_v19 }
 0x925   :  { %1724 = vmatmul.mubr.bf16.vlgmr.msra.gmra.mrb[16].mxu0 %v1529_v21  ;;  %3414 = vmatmul.mubr.bf16.vlgmr.msra.gmra.mrb[16].mxu1 %v1529_v21 }
 0x926   :  { %3433 = vmatprep.mubr.msk.bf16.mxu0 %vm3958_vm1, %v3956_v25  ;;  %2283 = vmatprep.mubr.bf16.mxu1 %v3957_v42 }
 0x927   :  { %3418 = vmatpush3.bf16.msra.mxu0 %v3635_v22 }
 0x928   :  { %3419 = vmatprep.subr.bf16.mxu0 %v3956_v25 }
 0x92b   :  { %3420 = vmatpush3.bf16.msra.mxu0 %v3636_v23 }
 0x92c   :  { %3421 = vmatprep.subr.bf16.mxu0 %v3956_v25 }
 0x92f   :  { %3422 = vmatpush3.bf16.msra.mxu0 %v3637_v24 }
 0x930   :  { %3423 = vmatprep.subr.bf16.mxu0 %v3956_v25 }
 0x933   :  { %3424 = vmatpush3.bf16.msra.mxu0 %v3638_v26 }
 0x934   :  { %3425 = vmatprep.subr.bf16.mxu0 %v3956_v25 }
 0x937   :  { %3426 = vmatpush3.bf16.msra.mxu0 %v3639_v27 }
 0x938   :  { %3427 = vmatprep.subr.bf16.mxu0 %v3956_v25 }
 0x93b   :  { %3428 = vmatpush3.bf16.msra.mxu0 %v3640_v28 }
 0x93c   :  { %3429 = vmatprep.subr.bf16.mxu0 %v3956_v25 }
 0x93f   :  { %3430 = vmatpush3.bf16.msra.mxu0 %v3641_v29 }
 0x940   :  { %3431 = vmatprep.subr.bf16.mxu0 %v3956_v25 }
 0x943   :  { %3432 = vmatpush3.bf16.msra.mxu0 %v3642_v31 }
 0x9f8   :  { %v1725_v34 = vpop.f32.mrb[16].mxu0  ;;  %v1766_v33 = vpop.f32.mrb[16].mxu1 }
 0x9f9   :  { %v1727_v37 = vpop.f32.mrb[17].mxu0  ;;  %v3415_v38 = vpop.f32.mrb[17].mxu1  ;;  %v3096_v58 = vmul.f32 -1.442695, %v1725_v34  ;;  %v1832_v63 = vrot.slane %v1766_v33, 1  ;;  %v1799_v12 = vrot.slane %v1766_v33, 3 }
 0x9fa   :  { %v1779_v39 = vrot.slane %v1727_v37, 2  ;;  %v1819_v40 = vrot.slane %v1727_v37, 5  ;;  %v1729_v41 = vpop.f32.mrb[18].mxu0  ;;  %v1769_v59 = vpop.f32.mrb[18].mxu1 }
 0x9fb   :  { %v1730_v43 = vpop.f32.mrb[19].mxu0  ;;  %v3416_v46 = vpop.f32.mrb[19].mxu1 }
 0x9fc   :  { %v1781_v0 = vadd.f32 %v4250_v53, %v1779_v39  ;;  %v4300_v44 = vmax.f32 %v1818_v35, %v1819_v40 }
 0x9fe   :  { %v1783_v4 = vrot.slane %v1781_v0, 3  ;;  %v1822_v13 = vsub.f32 %v1818_v35, %v4300_v44  ;;  %v1826_v17 = vrot.slane %v4300_v44, 3 }
 0xa00   :  { %v1785_v47 = vmax.f32 %v4255_v54, %v1783_v4  ;;  %v1823_v15 = vmul.f32 1.442695, %v1822_v13  ;;  %v1828_v48 = vsub.f32 %v1727_v37, %v1826_v17  ;;  %v3643_v17 = vld [vmem:[#allocation7 + $0x140] ss:$20 sps:$4 sm:$0xff]  }
 0xa02   :  { %v1786_v49 = vsub.f32 %v4255_v54, %v1785_v47  ;;  %v1790_v51 = vrot.slane %v1785_v47, 5  ;;  %3781 = vpow2.f32 %v1823_v15  ;;  %v1829_v52 = vmul.f32 1.442695, %v1828_v48  ;;  %v3648_v47 = vld [vmem:[#allocation7 + $0x14c] ss:$20 sps:$4 sm:$0xff]  }
 0xa03   :  { %v3646_v15 = vld [vmem:[#allocation7 + $0x148] ss:$20 sps:$4 sm:$0xff]   ;;  %2292 = vmatprep.subr.bf16.mxu0 %v3648_v47  ;;  %v3651_v48 = vld [vmem:[#allocation7 + $0x16c] ss:$20 sps:$4 sm:$0xff]  }
 0xa04   :  { %v1787_v45 = vmul.f32 1.442695, %v1786_v49  ;;  %v1792_v30 = vsub.f32 %v1781_v0, %v1790_v51  ;;  %3783 = vpow2.f32 %v1829_v52  ;;  %v3649_v49 = vld [vmem:[#allocation7 + $0x168] ss:$20 sps:$4 sm:$0xff]   ;;  %v3652_v52 = vld [vmem:[#allocation7 + $0x170] ss:$20 sps:$4 sm:$0xff]  }
 0xa05   :  { %v3654_v51 = vld [vmem:[#allocation7 + $0x174] ss:$20 sps:$4 sm:$0xff]  }
 0xa06   :  { %v1793_v53 = vmul.f32 1.442695, %v1792_v30  ;;  %3785 = vpow2.f32 %v1787_v45  ;;  %v3657_v45 = vld [vmem:[#allocation7 + $0x194] ss:$20 sps:$4 sm:$0xff]   ;;  %v3655_v30 = vld [vmem:[#allocation7 + $0x190] ss:$20 sps:$4 sm:$0xff]  }
 0xa08   :  { %3787 = vpow2.f32 %v1793_v53  ;;  %v3660_v53 = vld [vmem:[#allocation7 + $0x19c] ss:$20 sps:$4 sm:$0xff]  }
 0xa09   :  { %3789 = vpow2.f32 %v3096_v58  ;;  %v3658_v58 = vld [vmem:[#allocation7 + $0x198] ss:$20 sps:$4 sm:$0xff]  }
 0xa0c   :  { %v3782_v62 = vpop.eup %3781 }
 0xa0d   :  { %v1839_v2 = vmul.f32 %v3782_v62, %v1806_v60  ;;  %v1831_v3 = vmul.f32 %v3782_v62, %v1795_v57  ;;  %v3666_v62 = vld [vmem:[#allocation7 + $0x1c4] ss:$20 sps:$4 sm:$0xff]  }
 0xa0e   :  { %v3784_v6 = vpop.eup %3783 }
 0xa0f   :  { %v1834_v7 = vmul.f32 %v3784_v6, %v1832_v63  ;;  %v1841_v8 = vrot.slane %v3784_v6, 5  ;;  %v3664_v63 = vld [vmem:[#allocation7 + $0x1c0] ss:$20 sps:$4 sm:$0xff]  }
 0xa10   :  { %v3786_v9 = vpop.eup %3785  ;;  %v3672_v6 = vld [vmem:[#allocation7 + $0x1ec] ss:$20 sps:$4 sm:$0xff]  }
 0xa11   :  { %v1836_v10 = vrot.slane %v1834_v7, 5  ;;  %v4308_v11 = vadd.f32 %v1841_v8, %v1839_v2  ;;  %v1808_v18 = vmul.f32 %v3786_v9, %v1806_v60  ;;  %v1797_v24 = vmul.f32 %v3786_v9, %v1795_v57  ;;  %v3663_v60 = vld [vmem:[#allocation7 + $0x1bc] ss:$20 sps:$4 sm:$0xff]   ;;  %v3661_v57 = vld [vmem:[#allocation7 + $0x1b8] ss:$20 sps:$4 sm:$0xff]  }
 0xa12   :  { %v3788_v14 = vpop.eup %3787  ;;  %v3669_v2 = vld [vmem:[#allocation7 + $0x1e4] ss:$20 sps:$4 sm:$0xff]   ;;  %v3670_v7 = vld [vmem:[#allocation7 + $0x1e8] ss:$20 sps:$4 sm:$0xff]   ;;  %v3675_v8 = vld [vmem:[#allocation7 + $0x20c] ss:$20 sps:$4 sm:$0xff]  }
 0xa13   :  { %v4310_v16 = vadd.f32 %v1836_v10, %v1831_v3  ;;  %v1810_v19 = vrot.slane %v3788_v14, 3  ;;  %v1801_v21 = vmul.f32 %v3788_v14, %v1799_v12  ;;  %v3790_v22 = vpop.eup %3789  ;;  %v3667_v3 = vld [vmem:[#allocation7 + $0x1e0] ss:$20 sps:$4 sm:$0xff]   ;;  %v3673_v9 = vld [vmem:[#allocation7 + $0x208] ss:$20 sps:$4 sm:$0xff]  }
 0xa14   :  { %v1775_v27 = vadd.f32 1.0, %v3790_v22  ;;  %v3678_v10 = vld [vmem:[#allocation7 + $0x214] ss:$20 sps:$4 sm:$0xff]   ;;  %v3676_v12 = vld [vmem:[#allocation7 + $0x210] ss:$20 sps:$4 sm:$0xff]  }
 0xa15   :  { %v1812_v23 = vadd.f32 %v1810_v19, %v1808_v18  ;;  %v1803_v26 = vrot.slane %v1801_v21, 3  ;;  %v3679_v14 = vld [vmem:[#allocation7 + $0x230] ss:$20 sps:$4 sm:$0xff]   ;;  %v3681_v18 = vld [vmem:[#allocation7 + $0x234] ss:$20 sps:$4 sm:$0xff]  }
 0xa16   :  { %v3682_v19 = vld [vmem:[#allocation7 + $0x238] ss:$20 sps:$4 sm:$0xff]   ;;  %v3684_v21 = vld [vmem:[#allocation7 + $0x23c] ss:$20 sps:$4 sm:$0xff]  }
 0xa17   :  { %v1805_v28 = vadd.f32 %v1803_v26, %v1797_v24  ;;  %3791 = vrcp.f32 %v1812_v23  ;;  %v3687_v22 = vld [vmem:[#allocation7 + $0x25c] ss:$20 sps:$4 sm:$0xff]   ;;  %v3690_v23 = vld [vmem:[#allocation7 + $0x264] ss:$20 sps:$4 sm:$0xff]   ;;  %v3688_v26 = vld [vmem:[#allocation7 + $0x260] ss:$20 sps:$4 sm:$0xff]  }
 0xa18   :  { %3793 = vrcp.f32 %v1775_v27  ;;  %v3685_v24 = vld [vmem:[#allocation7 + $0x258] ss:$20 sps:$4 sm:$0xff]   ;;  %v3699_v27 = vld [vmem:[#allocation8 + $0x140] sm:$0xff]  }
 0xa21   :  { %v3792_v29 = vpop.eup %3791 }
 0xa22   :  { %v1814_v31 = vmul.f32 %v3792_v29, %v1805_v28  ;;  %v3794_v34 = vpop.eup %3793 }
 0xa24   :  { %v1845_v32 = vrot.slane %v1814_v31, 4 }
 0xa26   :  { %v1847_v35 = vmul.f32 %v3794_v34, %v1845_v32  ;;  %v1476_v32 = vrot.slane %v4259_v55, %v4110_v56 }
 0xa28   :  { %v1848_v33 = vpack.c.bf16 %v1847_v35, %v1847_v35  ;;  %v1968_v34 = vcombine.high %v1476_v32, %v1476_v32  ;;  %v3728_v32 = vld [vmem:[#allocation8 + $0x1b0] sm:$0xff]  }
 0xa2a   :  { %3434 = vmatmul.mubr.bf16.vlgmr.msra.gmra.mrb[20].mxu0 %v1848_v33  ;;  %v1971_v33 = vcombine.high %v4266_v61, %v4266_v61 }
 0xa2b   :  { %2324 = vmatprep.mubr.bf16.mxu0 %v3957_v42  ;;  %2293 = vmatpush1.bf16.msra.mxu0 %v3646_v15 }
 0xa2c   :  { %2294 = vmatprep.subr.bf16.mxu0 %v3654_v51  ;;  %v3701_v51 = vld [vmem:[#allocation8 + $0x148] sm:$0xff]  }
 0xa2f   :  { %2295 = vmatpush1.bf16.msra.mxu0 %v3652_v52  ;;  %v3693_v52 = vld [vmem:[#allocation7 + $0x1a0] ss:$20 sps:$4 sm:$0xff]  }
 0xa30   :  { %2296 = vmatprep.subr.bf16.mxu0 %v3660_v53  ;;  %v3694_v53 = vld [vmem:[#allocation7 + $0x1c8] ss:$20 sps:$4 sm:$0xff]  }
 0xa33   :  { %2297 = vmatpush1.bf16.msra.mxu0 %v3658_v58  ;;  %v3706_v58 = vld [vmem:[#allocation8 + $0x118] sm:$0xff]  }
 0xa34   :  { %2298 = vmatprep.subr.bf16.mxu0 %v3666_v62  ;;  %v3708_v62 = vld [vmem:[#allocation8 + $0x120] sm:$0xff]  }
 0xa37   :  { %2299 = vmatpush1.bf16.msra.mxu0 %v3664_v63  ;;  %v3709_v63 = vld [vmem:[#allocation8 + $0x168] sm:$0xff]  }
 0xa38   :  { %2300 = vmatprep.subr.bf16.mxu0 %v3672_v6  ;;  %v3697_v6 = vld [vmem:[#allocation7 + $0x240] ss:$20 sps:$4 sm:$0xff]  }
 0xa3b   :  { %2301 = vmatpush1.bf16.msra.mxu0 %v3670_v7  ;;  %v3698_v7 = vld [vmem:[#allocation7 + $0x268] ss:$20 sps:$4 sm:$0xff]  }
 0xa3c   :  { %2302 = vmatprep.subr.bf16.mxu0 %v3678_v10  ;;  %v3713_v10 = vld [vmem:[#allocation8 + $0x178] sm:$0xff]  }
 0xa3f   :  { %2303 = vmatpush1.bf16.msra.mxu0 %v3676_v12  ;;  %v3714_v12 = vld [vmem:[#allocation8 + $0x138] sm:$0xff]  }
 0xa40   :  { %2304 = vmatprep.subr.bf16.mxu0 %v3684_v21  ;;  %v3718_v21 = vld [vmem:[#allocation8 + $0x188] sm:$0xff]  }
 0xa43   :  { %2305 = vmatpush1.bf16.msra.mxu0 %v3682_v19  ;;  %v3717_v19 = vld [vmem:[#allocation8 + $0x1c8] sm:$0xff]  }
 0xa44   :  { %2306 = vmatprep.subr.bf16.mxu0 %v3690_v23  ;;  %v3721_v23 = vld [vmem:[#allocation8 + $0x1d8] sm:$0xff]  }
 0xa47   :  { %2307 = vmatpush1.bf16.msra.mxu0 %v3688_v26  ;;  %v3723_v26 = vld [vmem:[#allocation8 + $0x1e0] sm:$0xff]  }
 0xa48   :  { %3293 = vmatprep.subr.bf16.mxu0 %v3699_v27  ;;  %v3724_v27 = vld [vmem:[#allocation8 + $0x1a0] sm:$0xff]  }
 0xafd   :  { %v1948_v37 = vpop.f32.mrb[20].mxu0 }
 0xafe   :  { %v4314_v38 = vadd.f32 %v1948_v37, %v4229_v20  ;;  %v3435_v39 = vpop.f32.mrb[21].mxu0  ;;  %v3645_v20 = vld [vmem:[#allocation7 + $0x144] ss:$20 sps:$4 sm:$0xff]  }
 0xaff   :  { %v1951_v40 = vpop.f32.mrb[22].mxu0  ;;  %2251 = vmatprep.subr.bf16.mxu1 %v3645_v20 }
 0xb00   :  { %v3436_v41 = vpop.f32.mrb[23].mxu0  ;;  %v1955_v59 = vsel %vm107_vm0, %v4314_v38, 0.0  ;;  %2252 = vmatpush1.bf16.msra.mxu1 %v3643_v17  ;;  %v2750_v40 = vrot.slane %v4272_v1, %v4139_v5 }
 0xb01   :  { %1956 = vadd.xlane.f32.xlu0 %v1955_v59  ;;  %2253 = vmatprep.subr.bf16.mxu1 %v3651_v48  ;;  %v2753_v59 = vrot.slane %v4310_v16, 2  ;;  %v3691_v48 = vld [vmem:[#allocation7 + $0x150] ss:$20 sps:$4 sm:$0xff]  }
 0xb04   :  { %2254 = vmatpush1.bf16.msra.mxu1 %v3649_v49  ;;  %v3700_v49 = vld [vmem:[#allocation8 + $0x100] sm:$0xff]  }
 0xb05   :  { %2255 = vmatprep.subr.bf16.mxu1 %v3657_v45  ;;  %v3704_v45 = vld [vmem:[#allocation8 + $0x110] sm:$0xff]  }
 0xb08   :  { %2256 = vmatpush1.bf16.msra.mxu1 %v3655_v30  ;;  %v3705_v30 = vld [vmem:[#allocation8 + $0x158] sm:$0xff]  }
 0xb09   :  { %2257 = vmatprep.subr.bf16.mxu1 %v3663_v60  ;;  %v3707_v60 = vld [vmem:[#allocation8 + $0x160] sm:$0xff]  }
 0xb0c   :  { %2258 = vmatpush1.bf16.msra.mxu1 %v3661_v57  ;;  %v3695_v57 = vld [vmem:[#allocation7 + $0x1f0] ss:$20 sps:$4 sm:$0xff]  }
 0xb0d   :  { %2259 = vmatprep.subr.bf16.mxu1 %v3669_v2  ;;  %v3696_v2 = vld [vmem:[#allocation7 + $0x218] ss:$20 sps:$4 sm:$0xff]  }
 0xb10   :  { %2260 = vmatpush1.bf16.msra.mxu1 %v3667_v3  ;;  %v3710_v3 = vld [vmem:[#allocation8 + $0x128] sm:$0xff]  }
 0xb11   :  { %2261 = vmatprep.subr.bf16.mxu1 %v3675_v8  ;;  %v3711_v8 = vld [vmem:[#allocation8 + $0x170] sm:$0xff]  }
 0xb14   :  { %2262 = vmatpush1.bf16.msra.mxu1 %v3673_v9  ;;  %v3712_v9 = vld [vmem:[#allocation8 + $0x130] sm:$0xff]  }
 0xb15   :  { %2263 = vmatprep.subr.bf16.mxu1 %v3681_v18  ;;  %v3716_v18 = vld [vmem:[#allocation8 + $0x180] sm:$0xff]  }
 0xb18   :  { %2264 = vmatpush1.bf16.msra.mxu1 %v3679_v14  ;;  %v3715_v14 = vld [vmem:[#allocation8 + $0x1c0] sm:$0xff]  }
 0xb19   :  { %2265 = vmatprep.subr.bf16.mxu1 %v3687_v22  ;;  %v3719_v22 = vld [vmem:[#allocation8 + $0x1d0] sm:$0xff]  }
 0xb1c   :  { %2266 = vmatpush1.bf16.msra.mxu1 %v3685_v24  ;;  %v3722_v24 = vld [vmem:[#allocation8 + $0x198] sm:$0xff]  }
 0xb1d   :  { %3437 = vmatprep.subr.bf16.mxu1 %v3956_v25 }
 0xb8e   :  { %v1957_v43 = vpop.xlane.xlu0 %1956 }
 0xb8f   :  { %v1958_v46 = vmul.f32 0.0078125, %v1957_v43  ;;  %v2756_v43 = vrot.slane %v4308_v11, 1 }
 0xb91   :  { %v4319_v0 = vsub.f32 %v4314_v38, %v1958_v46 }
 0xb93   :  { %v1960_v4 = vmul.f32 %v4319_v0, %v4319_v0 }
 0xb95   :  { %v1961_v13 = vsel %vm107_vm0, %v1960_v4, 0.0 }
 0xb96   :  { %1962 = vadd.xlane.f32.xlu1 %v1961_v13 }
 0xc23   :  { %v1963_v28 = vpop.xlane.xlu1 %1962 }
 0xc24   :  { %v1964_v29 = vmul.f32 0.0078125, %v1963_v28  ;;  %v3725_v28 = vld [vmem:[#allocation8 + $0x1e8] sm:$0xff]  }
 0xc26   :  { %v1965_v31 = vadd.f32 1e-05, %v1964_v29  ;;  %v3726_v29 = vld [vmem:[#allocation8 + $0x1a8] sm:$0xff]  }
 0xc28   :  { %3795 = vrsqrt.f32 %v1965_v31  ;;  %v3727_v31 = vld [vmem:[#allocation8 + $0x1f0] sm:$0xff]  }
 0xc32   :  { %v3796_v35 = vpop.eup %3795 }
 0xc33   :  { %v1967_v37 = vmul.f32 %v3796_v35, %v4319_v0  ;;  %v3730_v35 = vld [vmem:[#allocation8 + $0x1b8] sm:$0xff]  }
 0xc35   :  { %v1970_v39 = vmul.f32 %v1968_v34, %v1967_v37  ;;  %v3729_v34 = vld [vmem:[#allocation8 + $0x1f8] sm:$0xff]  }
 0xc37   :  { %v1973_v41 = vadd.f32 %v1971_v33, %v1970_v39 }
 0xc39   :  { %v1974_v46 = vsub.f32 %v1973_v41, %v4255_v54  ;;  %v2758_v55 = vsel %vm107_vm0, %v1973_v41, %v2750_v40 }
 0xc3a   :  { %v2759_v4 = vsel %vm208_vm2, %v2758_v55, %v2753_v59 }
 0xc3b   :  { %v2760_v13 = vsel %vm1437_vm3, %v2759_v4, %v2756_v43  ;;  %v1979_v61 = vrot.slane %v1974_v46, %v4139_v5 }
 0xc3c   :  { %v2761_v0 = vsel %vm1439_vm4, %v2760_v13, %v4300_v44  ;;  %v3692_v44 = vld [vmem:[#allocation7 + $0x178] ss:$20 sps:$4 sm:$0xff]  }
 0xc3d   :  { %3178 = vst [vmem:[%s4392_s10 + $0x8] sm:$0x1f] %v2761_v0  ;;  %v1981_v1 = vmul.f32 %v4295_v36, %v1979_v61  ;;  %v3702_v36 = vld [vmem:[#allocation8 + $0x108] sm:$0xff]  }
 0xc3f   :  { %v1983_v11 = vrot.slane %v1981_v1, 2  ;;  %v1986_v16 = vrot.slane %v1981_v1, 1 }
 0xc41   :  { %v1988_v20 = vadd.f32 %v4255_v54, %v1986_v16  ;;  %v1985_v17 = vadd.f32 %v4255_v54, %v1983_v11  ;;  %v3703_v54 = vld [vmem:[#allocation8 + $0x150] sm:$0xff]  }
 0xc43   :  { %v1990_v47 = vrot.slane %v1988_v20, 7 }
 0xc45   :  { %v1992_v15 = vsel %vm107_vm0, %v1985_v17, %v1990_v47 }
 0xc46   :  { %v1993_v5 = vpack.c.bf16 %v1992_v15, %v1992_v15 }
 0xc48   :  { %2284 = vmatmul.mubr.bf16.vlgmr.msra.gmra.mrb[20].mxu1 %v1993_v5  ;;  %2325 = vmatmul.mubr.bf16.vlgmr.msra.gmra.mrb[24].mxu0 %v1993_v5 }
 0xc49   :  { %3438 = vmatpush3.bf16.msra.mxu1 %v3691_v48  ;;  %3453 = vmatprep.mubr.msk.bf16.mxu1 %vm3958_vm1, %v3956_v25 }
 0xc4a   :  { %3439 = vmatprep.subr.bf16.mxu1 %v3956_v25  ;;  %3294 = vmatpush3.bf16.msra.mxu0 %v3700_v49 }
 0xc4b   :  { %3295 = vmatprep.subr.bf16.mxu0 %v3701_v51 }
 0xc4d   :  { %3440 = vmatpush3.bf16.msra.mxu1 %v3692_v44 }
 0xc4e   :  { %3441 = vmatprep.subr.bf16.mxu1 %v3956_v25  ;;  %3296 = vmatpush3.bf16.msra.mxu0 %v3702_v36 }
 0xc4f   :  { %3297 = vmatprep.subr.bf16.mxu0 %v3703_v54 }
 0xc51   :  { %3442 = vmatpush3.bf16.msra.mxu1 %v3693_v52 }
 0xc52   :  { %3443 = vmatprep.subr.bf16.mxu1 %v3956_v25  ;;  %3298 = vmatpush3.bf16.msra.mxu0 %v3704_v45 }
 0xc53   :  { %3299 = vmatprep.subr.bf16.mxu0 %v3705_v30 }
 0xc55   :  { %3444 = vmatpush3.bf16.msra.mxu1 %v3694_v53 }
 0xc56   :  { %3445 = vmatprep.subr.bf16.mxu1 %v3956_v25  ;;  %3300 = vmatpush3.bf16.msra.mxu0 %v3706_v58 }
 0xc57   :  { %3301 = vmatprep.subr.bf16.mxu0 %v3707_v60 }
 0xc59   :  { %3446 = vmatpush3.bf16.msra.mxu1 %v3695_v57 }
 0xc5a   :  { %3447 = vmatprep.subr.bf16.mxu1 %v3956_v25  ;;  %3302 = vmatpush3.bf16.msra.mxu0 %v3708_v62 }
 0xc5b   :  { %3303 = vmatprep.subr.bf16.mxu0 %v3709_v63 }
 0xc5d   :  { %3448 = vmatpush3.bf16.msra.mxu1 %v3696_v2 }
 0xc5e   :  { %3449 = vmatprep.subr.bf16.mxu1 %v3956_v25  ;;  %3304 = vmatpush3.bf16.msra.mxu0 %v3710_v3 }
 0xc5f   :  { %3305 = vmatprep.subr.bf16.mxu0 %v3711_v8 }
 0xc61   :  { %3450 = vmatpush3.bf16.msra.mxu1 %v3697_v6 }
 0xc62   :  { %3451 = vmatprep.subr.bf16.mxu1 %v3956_v25  ;;  %3306 = vmatpush3.bf16.msra.mxu0 %v3712_v9  ;;  %v3720_v25 = vld [vmem:[#allocation8 + $0x190] sm:$0xff]  }
 0xc63   :  { %3307 = vmatprep.subr.bf16.mxu0 %v3713_v10 }
 0xc65   :  { %3452 = vmatpush3.bf16.msra.mxu1 %v3698_v7 }
 0xc66   :  { %3308 = vmatpush3.bf16.msra.mxu0 %v3714_v12  ;;  %3315 = vmatprep.subr.bf16.mxu1 %v3715_v14 }
 0xc68   :  { %3454 = vmatmul.mubr.bf16.vlgmr.msra.gmra.mrb[24].mxu1 %v1993_v5 }
 0xc69   :  { %3316 = vmatpush3.bf16.msra.mxu1 %v3716_v18  ;;  %v3731_v18 = vld [vmem:[#allocation10] ss:$8 sps:$4 sm:$0xff]  }
 0xc6a   :  { %3317 = vmatprep.subr.bf16.mxu1 %v3717_v19  ;;  %v3733_v19 = vld [vmem:[#allocation10 + $0x4] ss:$8 sps:$4 sm:$0xff]  }
 0xc6b   :  { %2878 = vmatprep.subr.bf16.mxu0 %v3733_v19 }
 0xc6d   :  { %3318 = vmatpush3.bf16.msra.mxu1 %v3718_v21  ;;  %v3736_v21 = vld [vmem:[#allocation10 + $0x14] ss:$8 sps:$4 sm:$0xff]  }
 0xc6e   :  { %3319 = vmatprep.subr.bf16.mxu1 %v3719_v22  ;;  %v3734_v22 = vld [vmem:[#allocation10 + $0x10] ss:$8 sps:$4 sm:$0xff]  }
 0xc71   :  { %3320 = vmatpush3.bf16.msra.mxu1 %v3720_v25  ;;  %v3739_v25 = vld [vmem:[#allocation10 + $0x24] ss:$8 sps:$4 sm:$0xff]  }
 0xc72   :  { %3321 = vmatprep.subr.bf16.mxu1 %v3721_v23  ;;  %v3737_v23 = vld [vmem:[#allocation10 + $0x20] ss:$8 sps:$4 sm:$0xff]  }
 0xc75   :  { %3322 = vmatpush3.bf16.msra.mxu1 %v3722_v24 }
 0xc76   :  { %3323 = vmatprep.subr.bf16.mxu1 %v3723_v26 }
 0xc79   :  { %3324 = vmatpush3.bf16.msra.mxu1 %v3724_v27 }
 0xc7a   :  { %3325 = vmatprep.subr.bf16.mxu1 %v3725_v28 }
 0xc7d   :  { %3326 = vmatpush3.bf16.msra.mxu1 %v3726_v29  ;;  %v3742_v29 = vld [vmem:[#allocation10 + $0x34] ss:$8 sps:$4 sm:$0xff]  }
 0xc7e   :  { %3327 = vmatprep.subr.bf16.mxu1 %v3727_v31  ;;  %v3740_v31 = vld [vmem:[#allocation10 + $0x30] ss:$8 sps:$4 sm:$0xff]  }
 0xc81   :  { %3328 = vmatpush3.bf16.msra.mxu1 %v3728_v32  ;;  %v3745_v32 = vld [vmem:[#allocation10 + $0x44] ss:$8 sps:$4 sm:$0xff]  }
 0xc82   :  { %3329 = vmatprep.subr.bf16.mxu1 %v3729_v34  ;;  %v3743_v34 = vld [vmem:[#allocation10 + $0x40] ss:$8 sps:$4 sm:$0xff]  }
 0xc85   :  { %3330 = vmatpush3.bf16.msra.mxu1 %v3730_v35  ;;  %v3748_v35 = vld [vmem:[#allocation10 + $0x54] ss:$8 sps:$4 sm:$0xff]  }
 0xd1b   :  { %v2285_v33 = vpop.f32.mrb[20].mxu1  ;;  %v2326_v37 = vpop.f32.mrb[24].mxu0 }
 0xd1c   :  { %v2380_v39 = vmax.f32 %v2326_v37, 0.0  ;;  %v2287_v40 = vpop.f32.mrb[21].mxu1  ;;  %v2328_v41 = vpop.f32.mrb[25].mxu0  ;;  %v3751_v37 = vld [vmem:[#allocation10 + $0x64] ss:$8 sps:$4 sm:$0xff]  }
 0xd1d   :  { %v2379_v59 = vmax.f32 %v2287_v40, 0.0  ;;  %v2289_v43 = vpop.f32.mrb[22].mxu1  ;;  %v2330_v46 = vpop.f32.mrb[26].mxu0  ;;  %v2381_v20 = vmax.f32 %v2328_v41, 0.0  ;;  %v3754_v40 = vld [vmem:[#allocation10 + $0x74] ss:$8 sps:$4 sm:$0xff]  }
 0xd1e   :  { %v2384_v55 = vmul.f32 %v2380_v39, %v2380_v39  ;;  %v2290_v4 = vpop.f32.mrb[23].mxu1  ;;  %v2331_v13 = vpop.f32.mrb[27].mxu0  ;;  %v3749_v39 = vld [vmem:[#allocation10 + $0x60] ss:$8 sps:$4 sm:$0xff]   ;;  %v3752_v41 = vld [vmem:[#allocation10 + $0x70] ss:$8 sps:$4 sm:$0xff]  }
 0xd1f   :  { %v2383_v61 = vmul.f32 %v2379_v59, %v2379_v59  ;;  %v2385_v17 = vmul.f32 %v2381_v20, %v2381_v20  ;;  %v2764_v4 = vld [vmem:[%s4383_s1 + $0x2] sm:$0x1] }
 0xd20   :  { %v2388_v0 = vpack.c.bf16 %v2384_v55, %v2384_v55 }
 0xd21   :  { %v2387_v1 = vpack.c.bf16 %v2383_v61, %v2383_v61  ;;  %v2389_v44 = vpack.c.bf16 %v2385_v17, %v2385_v17  ;;  %v2765_v61 = vld [vmem:[%s4383_s1 + $0x3] sm:$0x1]  ;;  %s3913_s1 = scalar_lea.vmem %s2949_s15, 32 }
 0xd22   :  { %v2460_v11 = vshrl.u32 %v2388_v0, 16  ;;  %p3914_p12 = scmp.ne.s32.totalorder %s2949_s15, %s3913_s1  ;;  %p3919_p0 = scmp.lt.s32.totalorder %s3913_s1, %s3913_s1 }
 0xd23   :  { %v2457_v16 = vshrl.u32 %v2387_v1, 16  ;;  %v2463_v52 = vshrl.u32 %v2389_v44, 16 }
 0xd24   :  { %2696 = vmatprep.mubr.bf16.mxu0 %v2460_v11  ;;  %p3920_p1 = por %p3919_p0, %p3918_p13 }
 0xd25   :  { %2697 = vmatmul.mubr.bf16.vlgmr.msra.gmra.mrb[28].mxu0 %v2457_v16 }
 0xd26   :  { %2910 = vmatprep.mubr.bf16.mxu0 %v3957_v42  ;;  %v3145_v42 = vmul.f32 -1.442695, %v2285_v33  ;;  %2879 = vmatpush1.bf16.msra.mxu0 %v3731_v18  ;;  %v3746_v33 = vld [vmem:[#allocation10 + $0x50] ss:$8 sps:$4 sm:$0xff]   ;;  %p3921_p2 = pnand %p3920_p1, %p3914_p12 }
 0xd27   :  { %2880 = vmatprep.subr.bf16.mxu0 %v3736_v21 }
 0xd28   :  { %3797 = vpow2.f32 %v3145_v42 }
 0xd2a   :  { %2881 = vmatpush1.bf16.msra.mxu0 %v3734_v22 }
 0xd2b   :  { %2882 = vmatprep.subr.bf16.mxu0 %v3739_v25 }
 0xd2e   :  { %2883 = vmatpush1.bf16.msra.mxu0 %v3737_v23 }
 0xd2f   :  { %2884 = vmatprep.subr.bf16.mxu0 %v3742_v29 }
 0xd32   :  { %v3798_v57 = vpop.eup %3797  ;;  %2885 = vmatpush1.bf16.msra.mxu0 %v3740_v31 }
 0xd33   :  { %v2376_v62 = vadd.f32 1.0, %v3798_v57  ;;  %2886 = vmatprep.subr.bf16.mxu0 %v3745_v32 }
 0xd35   :  { %3799 = vrcp.f32 %v2376_v62 }
 0xd36   :  { %2887 = vmatpush1.bf16.msra.mxu0 %v3743_v34 }
 0xd37   :  { %2888 = vmatprep.subr.bf16.mxu0 %v3748_v35 }
 0xd3a   :  { %2889 = vmatpush1.bf16.msra.mxu0 %v3746_v33 }
 0xd3b   :  { %v2367_v47 = vpop.f32.mrb[24].mxu1  ;;  %2890 = vmatprep.subr.bf16.mxu0 %v3751_v37 }
 0xd3c   :  { %v2382_v15 = vmax.f32 %v2367_v47, 0.0  ;;  %v3455_v48 = vpop.f32.mrb[25].mxu1 }
 0xd3d   :  { %v2370_v5 = vpop.f32.mrb[26].mxu1 }
 0xd3e   :  { %v2386_v49 = vmul.f32 %v2382_v15, %v2382_v15  ;;  %v3456_v51 = vpop.f32.mrb[27].mxu1  ;;  %2891 = vmatpush1.bf16.msra.mxu0 %v3749_v39 }
 0xd3f   :  { %v3800_v9 = vpop.eup %3799  ;;  %2892 = vmatprep.subr.bf16.mxu0 %v3754_v40 }
 0xd40   :  { %v2390_v36 = vpack.c.bf16 %v2386_v49, %v2386_v49 }
 0xd42   :  { %v2466_v54 = vshrl.u32 %v2390_v36, 16  ;;  %2893 = vmatpush1.bf16.msra.mxu0 %v3752_v41 }
 0xd44   :  { %2736 = vmatprep.mubr.bf16.mxu1 %v2466_v54 }
 0xd45   :  { %2737 = vmatmul.mubr.bf16.vlgmr.msra.gmra.mrb[28].mxu1 %v2463_v52 }
 0xdf8   :  { %v3309_v45 = vpop.f32.mrb[28].mxu0 }
 0xdf9   :  { %v3310_v30 = vpop.f32.mrb[29].mxu0 }
 0xdfa   :  { %v3311_v53 = vadd.f32 %v3310_v30, %v3309_v45  ;;  %v3312_v58 = vpop.f32.mrb[30].mxu0 }
 0xdfb   :  { %v3313_v60 = vpop.f32.mrb[31].mxu0 }
 0xe18   :  { %v3331_v63 = vpop.f32.mrb[28].mxu1 }
 0xe19   :  { %v3332_v2 = vpop.f32.mrb[29].mxu1 }
 0xe1a   :  { %v3333_v3 = vadd.f32 %v3332_v2, %v3331_v63  ;;  %v3334_v6 = vpop.f32.mrb[30].mxu1 }
 0xe1b   :  { %v3335_v7 = vpop.f32.mrb[31].mxu1 }
 0xe1c   :  { %v2739_v8 = vadd.f32 %v3333_v3, %v3311_v53 }
 0xe1e   :  { %v2744_v10 = vmul.f32 %v3800_v9, %v2739_v8 }
 0xe20   :  { %v2745_v12 = vadd.f32 %v2744_v10, %v4314_v38 }
 0xe22   :  { %v2766_v14 = vsel %vm107_vm0, %v2745_v12, 0.0 }
 0xe23   :  { %2767 = vadd.xlane.f32.xlu0 %v2766_v14 }
 0xeb0   :  { %v2768_v24 = vpop.xlane.xlu0 %2767 }
 0xeb1   :  { %v2769_v26 = vmul.f32 0.0078125, %v2768_v24 }
 0xeb3   :  { %v2770_v27 = vsub.f32 %v2745_v12, %v2769_v26 }
 0xeb5   :  { %v2771_v28 = vmul.f32 %v2770_v27, %v2770_v27 }
 0xeb7   :  { %v2772_v38 = vsel %vm107_vm0, %v2771_v28, 0.0 }
 0xeb8   :  { %2773 = vadd.xlane.f32.xlu1 %v2772_v38 }
 0xf45   :  { %v2774_v59 = vpop.xlane.xlu1 %2773 }
 0xf46   :  { %v2775_v43 = vmul.f32 0.0078125, %v2774_v59 }
 0xf48   :  { %v2776_v46 = vadd.f32 1e-05, %v2775_v43 }
 0xf4a   :  { %3801 = vrsqrt.f32 %v2776_v46 }
 0xf54   :  { %v3802_v55 = vpop.eup %3801 }
 0xf55   :  { %v2778_v13 = vmul.f32 %v3802_v55, %v2770_v27 }
 0xf57   :  { %v2779_v0 = vmul.f32 %v2778_v13, %v2764_v4 }
 0xf59   :  { %v2780_v1 = vadd.f32 %v2779_v0, %v2765_v61 }
 0xf5b   :  { %v2781_v11 = vpack.c.bf16 %v2780_v1, %v2780_v1 }
 0xf5d   :  { %2911 = vmatmul.mubr.bf16.vlgmr.msra.gmra.mrb[32].mxu0 %v2781_v11 }
0x1030   :  { %v2912_v16 = vpop.f32.mrb[32].mxu0 }
0x1031   :  { %v2914_v20 = vpop.f32.mrb[33].mxu0 }
0x1032   :  { %v2921_v17 = vcombine.low %v2912_v16, %v2914_v20  ;;  %v2916_v47 = vpop.f32.mrb[34].mxu0 }
0x1033   :  { %v2917_v15 = vpop.f32.mrb[35].mxu0 }
0x1034   :  { %v2928_v48 = vrot.slane %v2921_v17, %v4110_v56 }
0x1036   :  { %v2935_v5 = vrot.slane %v2928_v48, %v4110_v56 }
0x1038   :  { %2941 = vst.msk [vmem:[#allocation11] sm:$0x3] %vm2939_vm5, %v2935_v5 }
0x1039   :  { %3924 = shalt.err (!%p3921_p2)
}
0x103a   :  { %s3925_s18 = scalar_lea.hbm %s4391_s9, 32 }
0x103b   :  { %p3926_p3 = scmp.ne.s32.totalorder %s4391_s9, %s3925_s18  ;;  %p3929_p4 = scmp.lt.u32.totalorder %s3925_s18, %s4391_s9 }
0x103d   :  { %p3931_p5 = pnand %p3929_p4, %p3926_p3 }
0x103f   :  { %3934 = shalt.err (!%p3931_p5)
}
0x1040   :  { %2951 = dma.vmem_to_hbm [thread:$0]  %s2949_s15, 32, %s4391_s9, [#allocation4]  }
0x1041   :  { %3941 = dma.done.wait [#allocation4], 32  }
0x1042   :  { %3942 = vsyncadd [#allocation4], 4294967264 }
0x1043   :  { %2959 = vsyncpa [#allocation3], 1 }
0x1044   :  { %2960 = vsyncpa [#allocation6], 1 }
0x1045   :  { %2961 = vsyncpa [#allocation9], 1 }
0x1046   :  { %2962 = vsyncpa [#allocation4], 1 }

</bundles_post_ra>
